<compile_context>
chip_gen: v6e
topology: v6e:2x2x1
jax: 0.10.0
libtpu: 0.0.40
codegen_flags: <defaults>
</compile_context>

<pallas_src>
import functools
import math

import jax
import jax.numpy as jnp
import numpy as np
from jax import lax
from jax.experimental import pallas as pl
from jax.experimental.pallas import tpu as pltpu

_EPS = 1e-5   # GroupNorm / LayerNorm eps (PyTorch default)
_LANE = 128

# Row layout of the packed constants block (shape (16, Cp)).
_CW, _CB, _SW, _SB, _GNW, _GNB, _MASK, _B1, _FC2B, _LNW, _LNB = range(11)


def _round_up(x, m):
    return (x + m - 1) // m * m


def _sigmoid(x):
    # sigmoid(x) = 0.5*(1 + tanh(x/2)): one EUP transcendental instead of
    # exp + reciprocal (EUP is the scarce unit for the gating path).
    return 0.5 * (1.0 + jnp.tanh(0.5 * x))


def _erf(x):
    # Abramowitz & Stegun 7.1.26 polynomial (|err| < 1.5e-7 ~ f32 noise),
    # built only from Mosaic-supported primitives.
    a1, a2, a3, a4, a5 = (0.254829592, -0.284496736, 1.421413741,
                          -1.453152027, 1.061405429)
    p = 0.3275911
    s = jnp.where(x >= 0.0, 1.0, -1.0)
    ax = jnp.abs(x)
    # approx reciprocal -> EUP slot instead of the VALU Newton divide
    t = pl.reciprocal(1.0 + p * ax, approx=True)
    poly = ((((a5 * t + a4) * t + a3) * t + a2) * t + a1) * t
    return s * (1.0 - poly * jnp.exp(-ax * ax))


def _gelu_exact(x):
    # PyTorch nn.GELU default (approximate='none'): 0.5*x*(1+erf(x/sqrt(2)))
    return 0.5 * x * (1.0 + _erf(x * (1.0 / math.sqrt(2.0))))


def _sha_fusion_kernel(xv_ref, xi_ref, w1v_ref, w1i_ref, consts_ref,
                       fc1w_ref, fc1b_ref, fc2w_ref, out_ref,
                       *, n_tok, c_real, bb):
    cp = out_ref.shape[-1]                      # padded channel count (lane-dense)
    rows = bb * n_tok

    xv = xv_ref[...]                            # (rows, Cp) bf16
    xi = xi_ref[...]                            # (rows, Cp) bf16

    # linear(cat(x_v, x_i)) as two bf16 MXU matmuls, f32 accumulate.  The
    # channel_shuffle permutation is already folded into w1/b1/SHA offline.
    lin = (jnp.dot(xv, w1v_ref[...], preferred_element_type=jnp.float32)
           + jnp.dot(xi, w1i_ref[...], preferred_element_type=jnp.float32)
           + consts_ref[_B1:_B1 + 1, :])                         # (rows, Cp) f32

    cw = consts_ref[_CW:_CW + 1, :]
    cb = consts_ref[_CB:_CB + 1, :]
    sw = consts_ref[_SW:_SW + 1, :]
    sb = consts_ref[_SB:_SB + 1, :]
    gnw = consts_ref[_GNW:_GNW + 1, :]
    gnb = consts_ref[_GNB:_GNB + 1, :]
    mask = consts_ref[_MASK:_MASK + 1, :].reshape(1, 1, cp)   # 1 -> channel branch

    # ShuffleAttention gating, vectorized over the bb batch elements in this
    # block.  Avg-pool / per-channel GroupNorm reduce over the n_tok spatial
    # tokens of each batch element; one-pass mean / mean-of-squares stats.
    lin3 = lin.reshape(bb, n_tok, cp)
    mean = jnp.mean(lin3, axis=1, keepdims=True)                  # (bb, 1, Cp)
    var = jnp.mean(lin3 * lin3, axis=1, keepdims=True) - mean * mean
    gn = (lin3 - mean) * lax.rsqrt(var + _EPS) * gnw + gnb
    chan_gate = _sigmoid(cw * mean + cb)                          # (bb, 1, Cp)
    spat_gate = _sigmoid(sw * gn + sb)                            # (bb, n_tok, Cp)
    gate = jnp.where(mask != 0.0, chan_gate, spat_gate)           # single vsel
    s = (lin3 * gate).reshape(rows, cp)

    # x = sha(x) * (x_v + x_i)
    xsum = xv.astype(jnp.float32) + xi.astype(jnp.float32)
    x = s * xsum

    # Mlp: fc1 -> exact GELU -> fc2   (dropout p=0.0 -> identity)
    h = (jnp.dot(x.astype(jnp.bfloat16), fc1w_ref[...],
                 preferred_element_type=jnp.float32) + fc1b_ref[...])
    h = _gelu_exact(h)
    m = (jnp.dot(h.astype(jnp.bfloat16), fc2w_ref[...],
                 preferred_element_type=jnp.float32)
         + consts_ref[_FC2B:_FC2B + 1, :])

    # LayerNorm over the c_real true channels.  Padded lanes of m are exactly
    # 0 (zero-padded fc2 weight/bias), so one-pass sums over all Cp lanes
    # already equal sums over the real channels.
    inv_c = 1.0 / c_real
    mu = jnp.sum(m, axis=-1, keepdims=True) * inv_c
    var_ln = jnp.sum(m * m, axis=-1, keepdims=True) * inv_c - mu * mu
    ln = ((m - mu) * lax.rsqrt(var_ln + _EPS)
          * consts_ref[_LNW:_LNW + 1, :] + consts_ref[_LNB:_LNB + 1, :])

    out_ref[...] = x + ln          # padded lanes stay exactly 0


def _choose_bb(B, N):
    """Whole batch elements merged per grid block.

    Keep >= 2 grid blocks whenever B >= 2 (v7x has 2 TensorCores, and a
    1-step grid has no DMA/compute overlap); within that, pack as many rows
    as possible up to ~1024 per block to amortize the ~0.35 us per-grid-step
    overhead."""
    target_rows = 1024
    divisors = [d for d in range(1, B + 1) if B % d == 0]
    cands = [d for d in divisors if B // d >= 2] or divisors
    under = [d for d in cands if d * N <= target_rows]
    return max(under) if under else min(cands)


def sha_fusion_forward(x_v, x_i, lens_z, params):
    """x_v, x_i: (B, lens_z + N, C) token tensors. Returns (B, N, C) float32."""
    xv = x_v[:, lens_z:, :]
    xi = x_i[:, lens_z:, :]
    B, N, C = xv.shape
    Cp = params["w1v"].shape[1]
    Hp = params["fc1w"].shape[1]
    pad = Cp - C

    # bf16 tokens halve HBM/DMA traffic for the only input that scales with
    # B*N; channels zero-padded to Cp lanes so every vreg / store is
    # lane-dense.  No concat: the two streams are separate kernel inputs.
    xvp = jnp.pad(xv.astype(jnp.bfloat16),
                  ((0, 0), (0, 0), (0, pad))).reshape(B * N, Cp)
    xip = jnp.pad(xi.astype(jnp.bfloat16),
                  ((0, 0), (0, 0), (0, pad))).reshape(B * N, Cp)

    bb = _choose_bb(B, N)
    rows = bb * N

    def const_spec(shape):
        nd = len(shape)
        return pl.BlockSpec(shape, lambda i, _nd=nd: (0,) * _nd)

    kernel = functools.partial(_sha_fusion_kernel, n_tok=N, c_real=C, bb=bb)

    out = pl.pallas_call(
        kernel,
        out_shape=jax.ShapeDtypeStruct((B * N, Cp), jnp.float32),
        grid_spec=pltpu.PrefetchScalarGridSpec(
            num_scalar_prefetch=0,
            grid=(B // bb,),
            in_specs=[
                pl.BlockSpec((rows, Cp), lambda i: (i, 0)),   # x_v tokens (bf16)
                pl.BlockSpec((rows, Cp), lambda i: (i, 0)),   # x_i tokens (bf16)
                const_spec((Cp, Cp)),    # w1, x_v half (shuffle-folded, bf16)
                const_spec((Cp, Cp)),    # w1, x_i half (shuffle-folded, bf16)
                const_spec((16, Cp)),    # packed row constants (SHA/b1/fc2b/ln)
                const_spec((Cp, Hp)),    # fc1 weight (bf16)
                const_spec((1, Hp)),     # fc1 bias
                const_spec((Hp, Cp)),    # fc2 weight (bf16)
            ],
            out_specs=pl.BlockSpec((rows, Cp), lambda i: (i, 0)),
        ),
        compiler_params=pltpu.CompilerParams(
            dimension_semantics=("parallel",)),
        # If reused at large dim on v7x (64 MiB VMEM): add
        # pipeline_mode=pl.Buffered(1) to the constant-weight specs and set
        # vmem_limit_bytes.  Irrelevant at dim=48 (~0.4 MiB total).
    )(xvp, xip, params["w1v"], params["w1i"], params["consts"],
      params["fc1w"], params["fc1b"], params["fc2w"])

    return out.reshape(B, N, Cp)[:, :, :C]


def make_params(key, dim, G=12, lane=_LANE):
    """Synthetic SHA_Fusion(dim) parameters.

    Returns (kernel_params, raw_params): kernel_params have the
    channel_shuffle permutation folded into w1/b1/SHA rows, channels padded to
    a multiple of 128 lanes, MXU weights in bf16, and all row constants packed
    into one (16, Cp) block; raw_params are the plain f32 tensors for the
    pure-JAX reference."""
    C = dim
    assert C % (2 * G) == 0, "dim must be divisible by 2*G"
    Cg = C // G          # channels per shuffle group
    C2g = C // (2 * G)   # channels per half-group (cweight/sweight/gn size)
    Cp = _round_up(C, lane)
    Hd = 2 * C
    Hp = _round_up(Hd, lane)

    keys = jax.random.split(key, 14)
    std = 0.02

    def norm(k, shape):
        return std * jax.random.normal(k, shape, jnp.float32)

    # ---- raw (reference) parameters -----------------------------------------
    w1 = norm(keys[0], (2 * C, C))          # (in=2C, out=C)
    b1 = norm(keys[1], (C,))
    cweight = norm(keys[2], (C2g,))
    cbias = 1.0 + norm(keys[3], (C2g,))
    sweight = norm(keys[4], (C2g,))
    sbias = 1.0 + norm(keys[5], (C2g,))
    gnw = 1.0 + norm(keys[6], (C2g,))
    gnb = norm(keys[7], (C2g,))
    fc1w = norm(keys[8], (C, Hd))
    fc1b = norm(keys[9], (Hd,))
    fc2w = norm(keys[10], (Hd, C))
    fc2b = norm(keys[11], (C,))
    lnw = 1.0 + norm(keys[12], (C,))
    lnb = norm(keys[13], (C,))

    raw = dict(w1=w1, b1=b1, cweight=cweight, cbias=cbias, sweight=sweight,
               sbias=sbias, gnw=gnw, gnb=gnb, fc1w=fc1w, fc1b=fc1b,
               fc2w=fc2w, fc2b=fc2b, lnw=lnw, lnb=lnb, G=G)

    # ---- expand SHA params to full-channel rows ------------------------------
    # Channel j: group g = j // Cg, sub = j % Cg; sub < C2g -> channel branch
    # ("x_0"), else spatial branch ("x_1") with sub-index sub - C2g.
    j = np.arange(C)
    sub = j % Cg
    is_chan = sub < C2g
    idx_c = np.where(is_chan, sub, 0)
    idx_s = np.where(is_chan, 0, sub - C2g)

    def _np(a):
        return np.asarray(a, np.float32)

    sha_rows = np.stack([
        np.where(is_chan, _np(cweight)[idx_c], 0.0),
        np.where(is_chan, _np(cbias)[idx_c], 0.0),
        np.where(is_chan, 0.0, _np(sweight)[idx_s]),
        np.where(is_chan, 0.0, _np(sbias)[idx_s]),
        np.where(is_chan, 0.0, _np(gnw)[idx_s]),
        np.where(is_chan, 0.0, _np(gnb)[idx_s]),
        is_chan.astype(np.float32),
    ], axis=0).astype(np.float32)                        # (7, C)

    # ---- fold channel_shuffle(groups=2) into the producing side -------------
    # shuffled[:, new] = pre_shuffle[:, (new % 2)*(C//2) + new//2]
    new = np.arange(C)
    old = (new % 2) * (C // 2) + new // 2
    w1_f = _np(w1)[:, old]
    b1_f = _np(b1)[old]
    sha_f = sha_rows[:, old]

    # ---- pack all (1, C) row constants into one (16, Cp) block --------------
    consts = np.zeros((16, Cp), np.float32)
    consts[_CW:_MASK + 1, :C] = sha_f
    consts[_B1, :C] = b1_f
    consts[_FC2B, :C] = _np(fc2b)
    consts[_LNW, :C] = _np(lnw)
    consts[_LNB, :C] = _np(lnb)

    # ---- zero-pad channels C->Cp and hidden 2C->Hp (lane-dense) --------------
    w1vp = np.zeros((Cp, Cp), np.float32); w1vp[:C, :C] = w1_f[:C]
    w1ip = np.zeros((Cp, Cp), np.float32); w1ip[:C, :C] = w1_f[C:]
    fc1wp = np.zeros((Cp, Hp), np.float32); fc1wp[:C, :Hd] = _np(fc1w)
    fc1bp = np.zeros((1, Hp), np.float32); fc1bp[0, :Hd] = _np(fc1b)
    fc2wp = np.zeros((Hp, Cp), np.float32); fc2wp[:Hd, :C] = _np(fc2w)

    # Invariants the kernel's zero-pad handling relies on (padded lanes must
    # be exactly zero so output pad lanes stay zero and LN stats are exact).
    assert not consts[:, C:].any()
    assert not fc2wp[:, C:].any() and not fc1wp[C:, :].any()

    params = dict(
        w1v=jnp.asarray(w1vp, jnp.bfloat16),
        w1i=jnp.asarray(w1ip, jnp.bfloat16),
        consts=jnp.asarray(consts),
        fc1w=jnp.asarray(fc1wp, jnp.bfloat16),
        fc1b=jnp.asarray(fc1bp),
        fc2w=jnp.asarray(fc2wp, jnp.bfloat16),
    )
    return params, raw


def _reference_forward(x_v, x_i, lens_z, raw):
    """Pure-JAX f32 re-implementation of SHA_Fusion.forward (for checking)."""
    G = raw["G"]
    xv = x_v[:, lens_z:, :]
    xi = x_i[:, lens_z:, :]
    _, _, C = xv.shape
    Cg = C // G
    C2g = C // (2 * G)

    lin = jnp.concatenate([xv, xi], axis=-1) @ raw["w1"] + raw["b1"]   # (B,N,C)

    mean = jnp.mean(lin, axis=1, keepdims=True)
    var = jnp.mean((lin - mean) ** 2, axis=1, keepdims=True)

    j = jnp.arange(C)
    sub = j % Cg
    is_chan = sub < C2g
    idx_c = jnp.where(is_chan, sub, 0)
    idx_s = jnp.where(is_chan, 0, sub - C2g)
    cw = raw["cweight"][idx_c]; cb = raw["cbias"][idx_c]
    sw = raw["sweight"][idx_s]; sb = raw["sbias"][idx_s]
    gw = raw["gnw"][idx_s]; gb = raw["gnb"][idx_s]

    gn = (lin - mean) / jnp.sqrt(var + _EPS) * gw + gb
    chan_gate = jax.nn.sigmoid(cw * mean + cb)
    spat_gate = jax.nn.sigmoid(sw * gn + sb)
    gate = jnp.where(is_chan, chan_gate, spat_gate)
    s = lin * gate

    new = jnp.arange(C)
    old = (new % 2) * (C // 2) + new // 2
    s = s[:, :, old]                              # channel_shuffle(groups=2)

    x = s * (xv + xi)

    h = x @ raw["fc1w"] + raw["fc1b"]
    h = 0.5 * h * (1.0 + jax.scipy.special.erf(h * (1.0 / math.sqrt(2.0))))
    m = h @ raw["fc2w"] + raw["fc2b"]

    mu = jnp.mean(m, axis=-1, keepdims=True)
    v = jnp.mean((m - mu) ** 2, axis=-1, keepdims=True)
    ln = (m - mu) / jnp.sqrt(v + _EPS) * raw["lnw"] + raw["lnb"]
    return x + ln


if __name__ == "__main__":
    # dim=48 (divisible by 2*G=24), search region 8x8 -> N=64 tokens,
    # template lens_z=16 tokens (dead code in the reference forward).
    B, C, H, W = 2, 48, 8, 8
    lens_z = 16
    N = H * W

    key = jax.random.PRNGKey(0)
    k_v, k_i, k_p = jax.random.split(key, 3)
    x_v = jax.random.normal(k_v, (B, lens_z + N, C), jnp.float32)
    x_i = jax.random.normal(k_i, (B, lens_z + N, C), jnp.float32)
    params, raw = make_params(k_p, C)

    out = jax.block_until_ready(sha_fusion_forward(x_v, x_i, lens_z, params))
    assert out.shape == (B, N, C)
    assert bool(jnp.all(jnp.isfinite(out)))

    # Loose-tolerance check against a pure-JAX f32 reference (kernel runs bf16
    # tokens and bf16 MXU matmuls with f32 accumulation, so ~1e-3-level
    # differences are expected).
    ref = _reference_forward(x_v, x_i, lens_z, raw)
    err = jnp.abs(out - ref)
    tol = 5e-2 + 5e-2 * jnp.abs(ref)
    assert bool(jnp.all(err <= tol)), float(jnp.max(err))

    print("KERNEL_OK")
</pallas_src>

<mosaic_0001>
module attributes {stable_mosaic.version = 11 : i64} {
  func.func @_sha_fusion_kernel(%arg0: i32, %arg1: memref<64x128xbf16, #tpu.memory_space<vmem>>, %arg2: memref<64x128xbf16, #tpu.memory_space<vmem>>, %arg3: memref<128x128xbf16, #tpu.memory_space<vmem>>, %arg4: memref<128x128xbf16, #tpu.memory_space<vmem>>, %arg5: memref<16x128xf32, #tpu.memory_space<vmem>>, %arg6: memref<128x128xbf16, #tpu.memory_space<vmem>>, %arg7: memref<1x128xf32, #tpu.memory_space<vmem>>, %arg8: memref<128x128xbf16, #tpu.memory_space<vmem>>, %arg9: memref<64x128xf32, #tpu.memory_space<vmem>>) attributes {dimension_semantics = [#tpu.dimension_semantics<parallel>], iteration_bounds = array<i64: 2>, scalar_prefetch = 0 : i64, scratch_operands = 0 : i64, tpu.core_type = #tpu.core_type<tc>, window_params = [{transform_indices = @transform_0, window_bounds = array<i64: 64, 128>}, {transform_indices = @transform_1, window_bounds = array<i64: 64, 128>}, {pipeline_mode = #tpu.pipeline_mode<synchronous>, transform_indices = @transform_2, window_bounds = array<i64: 128, 128>}, {pipeline_mode = #tpu.pipeline_mode<synchronous>, transform_indices = @transform_3, window_bounds = array<i64: 128, 128>}, {pipeline_mode = #tpu.pipeline_mode<synchronous>, transform_indices = @transform_4, window_bounds = array<i64: 16, 128>}, {pipeline_mode = #tpu.pipeline_mode<synchronous>, transform_indices = @transform_5, window_bounds = array<i64: 128, 128>}, {pipeline_mode = #tpu.pipeline_mode<synchronous>, transform_indices = @transform_6, window_bounds = array<i64: 1, 128>}, {pipeline_mode = #tpu.pipeline_mode<synchronous>, transform_indices = @transform_7, window_bounds = array<i64: 128, 128>}, {transform_indices = @transform_8, window_bounds = array<i64: 64, 128>}]} {
    %c0 = arith.constant 0 : index
    %c0_0 = arith.constant 0 : index
    %0 = vector.load %arg1[%c0, %c0_0] : memref<64x128xbf16, #tpu.memory_space<vmem>>, vector<64x128xbf16>
    %c0_1 = arith.constant 0 : index
    %c0_2 = arith.constant 0 : index
    %1 = vector.load %arg2[%c0_1, %c0_2] : memref<64x128xbf16, #tpu.memory_space<vmem>>, vector<64x128xbf16>
    %c0_3 = arith.constant 0 : index
    %c0_4 = arith.constant 0 : index
    %2 = vector.load %arg3[%c0_3, %c0_4] : memref<128x128xbf16, #tpu.memory_space<vmem>>, vector<128x128xbf16>
    %cst = arith.constant dense<0.000000e+00> : vector<64x128xf32>
    %3 = tpu.matmul %0, %2, %cst {dimension_numbers = #tpu.dot_dimension_numbers<[1], [0], [0], [1], [0, 0, 1, 1], [], []>} : vector<64x128xbf16>, vector<128x128xbf16>, vector<64x128xf32> -> vector<64x128xf32>
    %c0_5 = arith.constant 0 : index
    %c0_6 = arith.constant 0 : index
    %4 = vector.load %arg4[%c0_5, %c0_6] : memref<128x128xbf16, #tpu.memory_space<vmem>>, vector<128x128xbf16>
    %cst_7 = arith.constant dense<0.000000e+00> : vector<64x128xf32>
    %5 = tpu.matmul %1, %4, %cst_7 {dimension_numbers = #tpu.dot_dimension_numbers<[1], [0], [0], [1], [0, 0, 1, 1], [], []>} : vector<64x128xbf16>, vector<128x128xbf16>, vector<64x128xf32> -> vector<64x128xf32>
    %6 = arith.addf %3, %5 : vector<64x128xf32>
    %c7 = arith.constant 7 : index
    %c0_8 = arith.constant 0 : index
    %7 = vector.load %arg5[%c7, %c0_8] : memref<16x128xf32, #tpu.memory_space<vmem>>, vector<1x128xf32>
    %8 = vector.broadcast %7 : vector<1x128xf32> to vector<64x128xf32>
    %9 = arith.addf %6, %8 : vector<64x128xf32>
    %c0_9 = arith.constant 0 : index
    %c0_10 = arith.constant 0 : index
    %10 = vector.load %arg5[%c0_9, %c0_10] : memref<16x128xf32, #tpu.memory_space<vmem>>, vector<1x128xf32>
    %c1 = arith.constant 1 : index
    %c0_11 = arith.constant 0 : index
    %11 = vector.load %arg5[%c1, %c0_11] : memref<16x128xf32, #tpu.memory_space<vmem>>, vector<1x128xf32>
    %c2 = arith.constant 2 : index
    %c0_12 = arith.constant 0 : index
    %12 = vector.load %arg5[%c2, %c0_12] : memref<16x128xf32, #tpu.memory_space<vmem>>, vector<1x128xf32>
    %c3 = arith.constant 3 : index
    %c0_13 = arith.constant 0 : index
    %13 = vector.load %arg5[%c3, %c0_13] : memref<16x128xf32, #tpu.memory_space<vmem>>, vector<1x128xf32>
    %c4 = arith.constant 4 : index
    %c0_14 = arith.constant 0 : index
    %14 = vector.load %arg5[%c4, %c0_14] : memref<16x128xf32, #tpu.memory_space<vmem>>, vector<1x128xf32>
    %c5 = arith.constant 5 : index
    %c0_15 = arith.constant 0 : index
    %15 = vector.load %arg5[%c5, %c0_15] : memref<16x128xf32, #tpu.memory_space<vmem>>, vector<1x128xf32>
    %c6 = arith.constant 6 : index
    %c0_16 = arith.constant 0 : index
    %16 = vector.load %arg5[%c6, %c0_16] : memref<16x128xf32, #tpu.memory_space<vmem>>, vector<1x128xf32>
    %17 = vector.shape_cast %16 : vector<1x128xf32> to vector<1x1x128xf32>
    %18 = vector.shape_cast %9 : vector<64x128xf32> to vector<1x64x128xf32>
    %cst_17 = arith.constant dense<0.000000e+00> : vector<1x128xf32>
    %19 = vector.multi_reduction <add>, %18, %cst_17 [1] : vector<1x64x128xf32> to vector<1x128xf32>
    %20 = vector.shape_cast %19 : vector<1x128xf32> to vector<1x1x128xf32>
    %cst_18 = arith.constant 6.400000e+01 : f32
    %21 = vector.broadcast %cst_18 : f32 to vector<1x1x128xf32>
    %22 = arith.divf %20, %21 : vector<1x1x128xf32>
    %23 = arith.mulf %18, %18 : vector<1x64x128xf32>
    %cst_19 = arith.constant dense<0.000000e+00> : vector<1x128xf32>
    %24 = vector.multi_reduction <add>, %23, %cst_19 [1] : vector<1x64x128xf32> to vector<1x128xf32>
    %25 = vector.shape_cast %24 : vector<1x128xf32> to vector<1x1x128xf32>
    %cst_20 = arith.constant 6.400000e+01 : f32
    %26 = vector.broadcast %cst_20 : f32 to vector<1x1x128xf32>
    %27 = arith.divf %25, %26 : vector<1x1x128xf32>
    %28 = arith.mulf %22, %22 : vector<1x1x128xf32>
    %29 = arith.subf %27, %28 : vector<1x1x128xf32>
    %30 = vector.broadcast %22 : vector<1x1x128xf32> to vector<1x64x128xf32>
    %31 = arith.subf %18, %30 : vector<1x64x128xf32>
    %cst_21 = arith.constant 9.99999974E-6 : f32
    %32 = vector.broadcast %cst_21 : f32 to vector<1x1x128xf32>
    %33 = arith.addf %29, %32 : vector<1x1x128xf32>
    %34 = math.rsqrt %33 : vector<1x1x128xf32>
    %35 = vector.broadcast %34 : vector<1x1x128xf32> to vector<1x64x128xf32>
    %36 = arith.mulf %31, %35 : vector<1x64x128xf32>
    %37 = vector.shape_cast %14 : vector<1x128xf32> to vector<1x1x128xf32>
    %38 = vector.broadcast %37 : vector<1x1x128xf32> to vector<1x64x128xf32>
    %39 = arith.mulf %36, %38 : vector<1x64x128xf32>
    %40 = vector.shape_cast %15 : vector<1x128xf32> to vector<1x1x128xf32>
    %41 = vector.broadcast %40 : vector<1x1x128xf32> to vector<1x64x128xf32>
    %42 = arith.addf %39, %41 : vector<1x64x128xf32>
    %43 = vector.shape_cast %10 : vector<1x128xf32> to vector<1x1x128xf32>
    %44 = arith.mulf %43, %22 : vector<1x1x128xf32>
    %45 = vector.shape_cast %11 : vector<1x128xf32> to vector<1x1x128xf32>
    %46 = arith.addf %44, %45 : vector<1x1x128xf32>
    %cst_22 = arith.constant 5.000000e-01 : f32
    %47 = vector.broadcast %cst_22 : f32 to vector<1x1x128xf32>
    %48 = arith.mulf %47, %46 : vector<1x1x128xf32>
    %49 = math.tanh %48 : vector<1x1x128xf32>
    %cst_23 = arith.constant 1.000000e+00 : f32
    %50 = vector.broadcast %cst_23 : f32 to vector<1x1x128xf32>
    %51 = arith.addf %50, %49 : vector<1x1x128xf32>
    %cst_24 = arith.constant 5.000000e-01 : f32
    %52 = vector.broadcast %cst_24 : f32 to vector<1x1x128xf32>
    %53 = arith.mulf %52, %51 : vector<1x1x128xf32>
    %54 = vector.shape_cast %12 : vector<1x128xf32> to vector<1x1x128xf32>
    %55 = vector.broadcast %54 : vector<1x1x128xf32> to vector<1x64x128xf32>
    %56 = arith.mulf %55, %42 : vector<1x64x128xf32>
    %57 = vector.shape_cast %13 : vector<1x128xf32> to vector<1x1x128xf32>
    %58 = vector.broadcast %57 : vector<1x1x128xf32> to vector<1x64x128xf32>
    %59 = arith.addf %56, %58 : vector<1x64x128xf32>
    %cst_25 = arith.constant 5.000000e-01 : f32
    %60 = vector.broadcast %cst_25 : f32 to vector<1x64x128xf32>
    %61 = arith.mulf %60, %59 : vector<1x64x128xf32>
    %62 = math.tanh %61 : vector<1x64x128xf32>
    %cst_26 = arith.constant 1.000000e+00 : f32
    %63 = vector.broadcast %cst_26 : f32 to vector<1x64x128xf32>
    %64 = arith.addf %63, %62 : vector<1x64x128xf32>
    %cst_27 = arith.constant 5.000000e-01 : f32
    %65 = vector.broadcast %cst_27 : f32 to vector<1x64x128xf32>
    %66 = arith.mulf %65, %64 : vector<1x64x128xf32>
    %cst_28 = arith.constant 0.000000e+00 : f32
    %67 = vector.broadcast %cst_28 : f32 to vector<1x1x128xf32>
    %68 = arith.cmpf one, %17, %67 : vector<1x1x128xf32>
    %69 = vector.shape_cast %68 : vector<1x1x128xi1> to vector<1x1x128xi1>
    %70 = vector.broadcast %69 : vector<1x1x128xi1> to vector<1x64x128xi1>
    %71 = vector.shape_cast %53 : vector<1x1x128xf32> to vector<1x1x128xf32>
    %72 = vector.broadcast %71 : vector<1x1x128xf32> to vector<1x64x128xf32>
    %73 = arith.select %70, %72, %66 : vector<1x64x128xi1>, vector<1x64x128xf32>
    %74 = arith.mulf %18, %73 : vector<1x64x128xf32>
    %75 = vector.shape_cast %74 : vector<1x64x128xf32> to vector<64x128xf32>
    %76 = arith.extf %0 : vector<64x128xbf16> to vector<64x128xf32>
    %77 = arith.extf %1 : vector<64x128xbf16> to vector<64x128xf32>
    %78 = arith.addf %76, %77 : vector<64x128xf32>
    %79 = arith.mulf %75, %78 : vector<64x128xf32>
    %80 = arith.truncf %79 : vector<64x128xf32> to vector<64x128xbf16>
    %c0_29 = arith.constant 0 : index
    %c0_30 = arith.constant 0 : index
    %81 = vector.load %arg6[%c0_29, %c0_30] : memref<128x128xbf16, #tpu.memory_space<vmem>>, vector<128x128xbf16>
    %cst_31 = arith.constant dense<0.000000e+00> : vector<64x128xf32>
    %82 = tpu.matmul %80, %81, %cst_31 {dimension_numbers = #tpu.dot_dimension_numbers<[1], [0], [0], [1], [0, 0, 1, 1], [], []>} : vector<64x128xbf16>, vector<128x128xbf16>, vector<64x128xf32> -> vector<64x128xf32>
    %c0_32 = arith.constant 0 : index
    %c0_33 = arith.constant 0 : index
    %83 = vector.load %arg7[%c0_32, %c0_33] : memref<1x128xf32, #tpu.memory_space<vmem>>, vector<1x128xf32>
    %84 = vector.broadcast %83 : vector<1x128xf32> to vector<64x128xf32>
    %85 = arith.addf %82, %84 : vector<64x128xf32>
    %cst_34 = arith.constant 5.000000e-01 : f32
    %86 = vector.broadcast %cst_34 : f32 to vector<64x128xf32>
    %87 = arith.mulf %86, %85 : vector<64x128xf32>
    %cst_35 = arith.constant 0.707106769 : f32
    %88 = vector.broadcast %cst_35 : f32 to vector<64x128xf32>
    %89 = arith.mulf %85, %88 : vector<64x128xf32>
    %cst_36 = arith.constant 0.000000e+00 : f32
    %90 = vector.broadcast %cst_36 : f32 to vector<64x128xf32>
    %91 = arith.cmpf oge, %89, %90 : vector<64x128xf32>
    %cst_37 = arith.constant 1.000000e+00 : f32
    %cst_38 = arith.constant -1.000000e+00 : f32
    %92 = vector.broadcast %cst_37 : f32 to vector<64x128xf32>
    %93 = vector.broadcast %cst_38 : f32 to vector<64x128xf32>
    %94 = arith.select %91, %92, %93 : vector<64x128xi1>, vector<64x128xf32>
    %95 = math.absf %89 : vector<64x128xf32>
    %cst_39 = arith.constant 0.327591091 : f32
    %96 = vector.broadcast %cst_39 : f32 to vector<64x128xf32>
    %97 = arith.mulf %96, %95 : vector<64x128xf32>
    %cst_40 = arith.constant 1.000000e+00 : f32
    %98 = vector.broadcast %cst_40 : f32 to vector<64x128xf32>
    %99 = arith.addf %98, %97 : vector<64x128xf32>
    %100 = tpu.reciprocal %99 {approx = true} : vector<64x128xf32> -> vector<64x128xf32>
    %cst_41 = arith.constant 1.06140542 : f32
    %101 = vector.broadcast %cst_41 : f32 to vector<64x128xf32>
    %102 = arith.mulf %101, %100 : vector<64x128xf32>
    %cst_42 = arith.constant -1.45315206 : f32
    %103 = vector.broadcast %cst_42 : f32 to vector<64x128xf32>
    %104 = arith.addf %102, %103 : vector<64x128xf32>
    %105 = arith.mulf %104, %100 : vector<64x128xf32>
    %cst_43 = arith.constant 1.42141378 : f32
    %106 = vector.broadcast %cst_43 : f32 to vector<64x128xf32>
    %107 = arith.addf %105, %106 : vector<64x128xf32>
    %108 = arith.mulf %107, %100 : vector<64x128xf32>
    %cst_44 = arith.constant -0.284496725 : f32
    %109 = vector.broadcast %cst_44 : f32 to vector<64x128xf32>
    %110 = arith.addf %108, %109 : vector<64x128xf32>
    %111 = arith.mulf %110, %100 : vector<64x128xf32>
    %cst_45 = arith.constant 0.254829586 : f32
    %112 = vector.broadcast %cst_45 : f32 to vector<64x128xf32>
    %113 = arith.addf %111, %112 : vector<64x128xf32>
    %114 = arith.mulf %113, %100 : vector<64x128xf32>
    %cst_46 = arith.constant 0.000000e+00 : f32
    %115 = vector.broadcast %cst_46 : f32 to vector<64x128xf32>
    %116 = arith.subf %115, %95 : vector<64x128xf32>
    %117 = arith.mulf %116, %95 : vector<64x128xf32>
    %118 = math.exp %117 : vector<64x128xf32>
    %119 = arith.mulf %114, %118 : vector<64x128xf32>
    %cst_47 = arith.constant 1.000000e+00 : f32
    %120 = vector.broadcast %cst_47 : f32 to vector<64x128xf32>
    %121 = arith.subf %120, %119 : vector<64x128xf32>
    %122 = arith.mulf %94, %121 : vector<64x128xf32>
    %cst_48 = arith.constant 1.000000e+00 : f32
    %123 = vector.broadcast %cst_48 : f32 to vector<64x128xf32>
    %124 = arith.addf %123, %122 : vector<64x128xf32>
    %125 = arith.mulf %87, %124 : vector<64x128xf32>
    %126 = arith.truncf %125 : vector<64x128xf32> to vector<64x128xbf16>
    %c0_49 = arith.constant 0 : index
    %c0_50 = arith.constant 0 : index
    %127 = vector.load %arg8[%c0_49, %c0_50] : memref<128x128xbf16, #tpu.memory_space<vmem>>, vector<128x128xbf16>
    %cst_51 = arith.constant dense<0.000000e+00> : vector<64x128xf32>
    %128 = tpu.matmul %126, %127, %cst_51 {dimension_numbers = #tpu.dot_dimension_numbers<[1], [0], [0], [1], [0, 0, 1, 1], [], []>} : vector<64x128xbf16>, vector<128x128xbf16>, vector<64x128xf32> -> vector<64x128xf32>
    %c8 = arith.constant 8 : index
    %c0_52 = arith.constant 0 : index
    %129 = vector.load %arg5[%c8, %c0_52] : memref<16x128xf32, #tpu.memory_space<vmem>>, vector<1x128xf32>
    %130 = vector.broadcast %129 : vector<1x128xf32> to vector<64x128xf32>
    %131 = arith.addf %128, %130 : vector<64x128xf32>
    %cst_53 = arith.constant dense<0.000000e+00> : vector<64xf32>
    %132 = vector.multi_reduction <add>, %131, %cst_53 [1] : vector<64x128xf32> to vector<64xf32>
    %133 = vector.shape_cast %132 : vector<64xf32> to vector<64x1xf32>
    %cst_54 = arith.constant 0.020833334 : f32
    %134 = vector.broadcast %cst_54 : f32 to vector<64x1xf32>
    %135 = arith.mulf %133, %134 : vector<64x1xf32>
    %136 = arith.mulf %131, %131 : vector<64x128xf32>
    %cst_55 = arith.constant dense<0.000000e+00> : vector<64xf32>
    %137 = vector.multi_reduction <add>, %136, %cst_55 [1] : vector<64x128xf32> to vector<64xf32>
    %138 = vector.shape_cast %137 : vector<64xf32> to vector<64x1xf32>
    %cst_56 = arith.constant 0.020833334 : f32
    %139 = vector.broadcast %cst_56 : f32 to vector<64x1xf32>
    %140 = arith.mulf %138, %139 : vector<64x1xf32>
    %141 = arith.mulf %135, %135 : vector<64x1xf32>
    %142 = arith.subf %140, %141 : vector<64x1xf32>
    %143 = vector.broadcast %135 : vector<64x1xf32> to vector<64x128xf32>
    %144 = arith.subf %131, %143 : vector<64x128xf32>
    %cst_57 = arith.constant 9.99999974E-6 : f32
    %145 = vector.broadcast %cst_57 : f32 to vector<64x1xf32>
    %146 = arith.addf %142, %145 : vector<64x1xf32>
    %147 = math.rsqrt %146 : vector<64x1xf32>
    %148 = vector.broadcast %147 : vector<64x1xf32> to vector<64x128xf32>
    %149 = arith.mulf %144, %148 : vector<64x128xf32>
    %c9 = arith.constant 9 : index
    %c0_58 = arith.constant 0 : index
    %150 = vector.load %arg5[%c9, %c0_58] : memref<16x128xf32, #tpu.memory_space<vmem>>, vector<1x128xf32>
    %151 = vector.broadcast %150 : vector<1x128xf32> to vector<64x128xf32>
    %152 = arith.mulf %149, %151 : vector<64x128xf32>
    %c10 = arith.constant 10 : index
    %c0_59 = arith.constant 0 : index
    %153 = vector.load %arg5[%c10, %c0_59] : memref<16x128xf32, #tpu.memory_space<vmem>>, vector<1x128xf32>
    %154 = vector.broadcast %153 : vector<1x128xf32> to vector<64x128xf32>
    %155 = arith.addf %152, %154 : vector<64x128xf32>
    %156 = arith.addf %79, %155 : vector<64x128xf32>
    %c0_60 = arith.constant 0 : index
    %c0_61 = arith.constant 0 : index
    %157 = vector.load %arg9[%c0_60, %c0_61] : memref<64x128xf32, #tpu.memory_space<vmem>>, vector<64x128xf32>
    tpu.vector_store %arg9[%c0_60, %c0_61], %156 {strides = array<i32>} : memref<64x128xf32, #tpu.memory_space<vmem>>, vector<64x128xf32>,
    return
  }
  func.func @transform_0(%arg0: i32) -> (i32, i32) {
    %c0_i32 = arith.constant 0 : i32
    %c0_i32_0 = arith.constant 0 : i32
    return %arg0, %c0_i32 : i32, i32
  }
  func.func @transform_1(%arg0: i32) -> (i32, i32) {
    %c0_i32 = arith.constant 0 : i32
    %c0_i32_0 = arith.constant 0 : i32
    return %arg0, %c0_i32 : i32, i32
  }
  func.func @transform_2(%arg0: i32) -> (i32, i32) {
    %c0_i32 = arith.constant 0 : i32
    %c0_i32_0 = arith.constant 0 : i32
    %c0_i32_1 = arith.constant 0 : i32
    return %c0_i32, %c0_i32_0 : i32, i32
  }
  func.func @transform_3(%arg0: i32) -> (i32, i32) {
    %c0_i32 = arith.constant 0 : i32
    %c0_i32_0 = arith.constant 0 : i32
    %c0_i32_1 = arith.constant 0 : i32
    return %c0_i32, %c0_i32_0 : i32, i32
  }
  func.func @transform_4(%arg0: i32) -> (i32, i32) {
    %c0_i32 = arith.constant 0 : i32
    %c0_i32_0 = arith.constant 0 : i32
    %c0_i32_1 = arith.constant 0 : i32
    return %c0_i32, %c0_i32_0 : i32, i32
  }
  func.func @transform_5(%arg0: i32) -> (i32, i32) {
    %c0_i32 = arith.constant 0 : i32
    %c0_i32_0 = arith.constant 0 : i32
    %c0_i32_1 = arith.constant 0 : i32
    return %c0_i32, %c0_i32_0 : i32, i32
  }
  func.func @transform_6(%arg0: i32) -> (i32, i32) {
    %c0_i32 = arith.constant 0 : i32
    %c0_i32_0 = arith.constant 0 : i32
    %c0_i32_1 = arith.constant 0 : i32
    return %c0_i32, %c0_i32_0 : i32, i32
  }
  func.func @transform_7(%arg0: i32) -> (i32, i32) {
    %c0_i32 = arith.constant 0 : i32
    %c0_i32_0 = arith.constant 0 : i32
    %c0_i32_1 = arith.constant 0 : i32
    return %c0_i32, %c0_i32_0 : i32, i32
  }
  func.func @transform_8(%arg0: i32) -> (i32, i32) {
    %c0_i32 = arith.constant 0 : i32
    %c0_i32_0 = arith.constant 0 : i32
    return %arg0, %c0_i32 : i32, i32
  }
}

</mosaic_0001>

<bundles_post_ra>
// kernel: tpu_custom_call.1
= control target key start
LH: loop header
LB: loop body
LE: loop exit
PB: predicated region body
PF: predicated region fallthrough
CT: control target
= control target key end

     0   :  { %s3228_s0 = inlined_call_operand.hbm [shape: bf16[128,128], index: 0, kind: input, shape index: {}]   ;;  %s3229_s1 = inlined_call_operand.hbm [shape: bf16[128,128], index: 1, kind: input, shape index: {}]   ;;  %s3230_s2 = inlined_call_operand.hbm [shape: bf16[128,128], index: 2, kind: input, shape index: {}]   ;;  %s3231_s3 = inlined_call_operand.hbm [shape: bf16[128,128], index: 3, kind: input, shape index: {}]   ;;  %s3232_s4 = inlined_call_operand.hbm [shape: f32[16,128], index: 4, kind: input, shape index: {}]   ;;  %s3233_s5 = inlined_call_operand.hbm [shape: bf16[128,128], index: 5, kind: input, shape index: {}]   ;;  %s3234_s6 = inlined_call_operand.vmem [shape: f32[1,128], index: 6, kind: input, shape index: {}]   ;;  %s3235_s7 = inlined_call_operand.hbm [shape: bf16[128,128], index: 7, kind: input, shape index: {}]   ;;  %s3236_s8 = inlined_call_operand.hbm [shape: f32[128,128], index: 8, kind: output, shape index: {}]  }
   0x1   :  { %3244 = sst [smem:[#allocation22_spill]] %s3228_s0 }
   0x2   :  { %3245 = sst [smem:[#allocation23_spill]] %s3230_s2 }
   0x3   :  { %3246 = sst [smem:[#allocation24_spill]] %s3231_s3 }
   0x4   :  { %3247 = sst [smem:[#allocation25_spill]] %s3232_s4 }
   0x5   :  { %3248 = sst [smem:[#allocation26_spill]] %s3233_s5 }
   0x6   :  { %3249 = sst [smem:[#allocation27_spill]] %s3235_s7 }
   0x7   :  { %13 = vsyncpa [#allocation3], 0 }
   0x8   :  { %15 = vsyncpa [#allocation3 + $0x1], 0 }
   0x9   :  { %16 = vsyncpa [#allocation6], 0 }
   0xa   :  { %18 = vsyncpa [#allocation6 + $0x1], 0 }
   0xb   :  { %19 = vsyncpa [#allocation9], 0 }
   0xc   :  { %20 = vsyncpa [#allocation12], 0 }
   0xd   :  { %21 = vsyncpa [#allocation4], 0 }
   0xe   :  { %23 = vsyncpa [#allocation4 + $0x1], 0  ;;  %s2552_s27 = smov 0   ;;  %s2554_s28 = smov 0  }
   0xf   :  { %s2556_s29 = smov 0   ;;  %s2558_s30 = smov 0  }
  0x10 LB: > { %s2491_s9 = smov [#allocation7]   ;;  %s2573_s11 = sadd.s32 4294967295, %s2489_s30   ;;  %s2489_s30 = sphi %s2558_s30, %s3280_s30   ;;  %s2485_s29 = sphi %s2556_s29, %s3279_s29   ;;  %s2481_s28 = sphi %s2554_s28, %s3278_s28   ;;  %s2477_s27 = sphi %s2552_s27, %s3277_s27  }
  0x11   : > { %s250_s10 = sshll.u32 %s2491_s9, 4  ;;  %p1774_p0 = scmp.ge.s32.totalorder %s2489_s30, 1  ;;  %s251_s10 = int_to_ptr.vmem [resolvable:$true] %s250_s10 }
  0x12   : > { %p3241_p1 = scmp.eq.s32.totalorder %s2573_s11, 0  ;;  %p238_p2 = scmp.lt.s32.totalorder %s2489_s30, 3 }
  0x13   : > { %s2492_s13 = smov [#allocation8]   ;;  %s2493_s16 = smov [#allocation11]  }
  0x14   : > { %p2578_p3 = pnand %p1774_p0, %p238_p2  ;;  %s263_s14 = sshll.u32 %s2492_s13, 4  ;;  %s2591_s14 = int_to_ptr.vmem [resolvable:$true] %s263_s14 }
  0x15   : > { %s289_s17 = sshll.u32 %s2493_s16, 4  ;;  %s2234_s19 = scalar_lea.vmem %s251_s10, 1024  ;;  %s2593_s17 = int_to_ptr.vmem [resolvable:$true] %s289_s17 }
  0x16   : > { %p2023_p5 = pneg %p2578_p3  ;;  %p2235_p8 = scmp.ne.s32.totalorder %s251_s10, %s2234_s19 }
  0x17   : > { %p2242_p11 = scmp.lt.s32.totalorder %s251_s10, %s251_s10  ;;  %p2243_p12 = scmp.lt.s32.totalorder %s2234_s19, %s2234_s19 }
  0x18   : > { %p2587_p6 = pnand %p2023_p5, %p3241_p1 }
  0x19   : > { %p2244_p13 = por %p2243_p12, %p2242_p11 }
  0x1a   : > { %p2597_p7 = pneg %p2587_p6 }
  0x1c   : > { %p2237_p9 = pnand %p2235_p8, %p2597_p7 }
  0x1e   : > { %p2238_p10 = pneg %p2237_p9 }
  0x20   : > { %p2245_p0 = pnand %p2244_p13, %p2238_p10 }
  0x22   : > { %2248 = shalt.err (!%p2245_p0)
}
  0x23   : > { %s3237_s20 = smov 64   ;;  %s3239_s21 = smov 4  }
  0x24   : > { %s3253_s2 = sld [smem:[#allocation23_spill]]  ;;  %s2260_s24 = scalar_lea.vmem %s2591_s14, 1024 }
  0x25   : > { %p2261_p2 = scmp.ne.s32.totalorder %s2591_s14, %s2260_s24  ;;  %p2268_p9 = scmp.lt.s32.totalorder %s2591_s14, %s2591_s14 }
  0x26   : > { %p2269_p10 = scmp.lt.s32.totalorder %s2260_s24, %s2260_s24 }
  0x27   : > { %p2263_p5 = pnand %p2261_p2, %p2597_p7 }
  0x28   : > { %p2270_p11 = por %p2269_p10, %p2268_p9 }
  0x29   : > { %p2264_p8 = pneg %p2263_p5 }
  0x2a   : > { %2026 = dma.hbm_to_vmem [thread:$0]  (!%p2587_p6), %s3253_s2, 1024, %s251_s10, [#allocation6], %s3237_s20, %s3237_s20, %s3239_s21  }
  0x2b   : > { %p2271_p12 = pnand %p2270_p11, %p2264_p8 }
  0x2d   : > { %2274 = shalt.err (!%p2271_p12)
}
  0x2e   : > { %s3254_s3 = sld [smem:[#allocation24_spill]]  ;;  %s2286_s9 = scalar_lea.vmem %s2593_s17, 1024 }
  0x2f   : > { %p2287_p13 = scmp.ne.s32.totalorder %s2593_s17, %s2286_s9  ;;  %p2294_p5 = scmp.lt.s32.totalorder %s2593_s17, %s2593_s17 }
  0x30   : > { %p2295_p8 = scmp.lt.s32.totalorder %s2286_s9, %s2286_s9 }
  0x31   : > { %p2289_p0 = pnand %p2287_p13, %p2597_p7 }
  0x32   : > { %p2296_p9 = por %p2295_p8, %p2294_p5 }
  0x33   : > { %p2290_p2 = pneg %p2289_p0 }
  0x34   : > { %2029 = dma.hbm_to_vmem [thread:$0]  (!%p2587_p6), %s3254_s3, 1024, %s2591_s14, [#allocation9], %s3237_s20, %s3237_s20, %s3239_s21  }
  0x35   : > { %p2297_p10 = pnand %p2296_p9, %p2290_p2 }
  0x37   : > { %2300 = shalt.err (!%p2297_p10)
}
  0x38   : > { %s3255_s5 = sld [smem:[#allocation26_spill]]  ;;  %s2496_s14 = smov [#allocation10]  }
  0x39   : > { %s276_s16 = sshll.u32 %s2496_s14, 4  ;;  %s277_s16 = int_to_ptr.vmem [resolvable:$true] %s276_s16 }
  0x3a   : > { %s2312_s19 = scalar_lea.vmem %s277_s16, 256  ;;  %p2320_p0 = scmp.lt.s32.totalorder %s277_s16, %s277_s16 }
  0x3b   : > { %p2313_p11 = scmp.ne.s32.totalorder %s277_s16, %s2312_s19  ;;  %p2321_p2 = scmp.lt.s32.totalorder %s2312_s19, %s2312_s19 }
  0x3d   : > { %p2315_p12 = pnand %p2313_p11, %p2597_p7  ;;  %p2322_p5 = por %p2321_p2, %p2320_p0 }
  0x3e   : > { %2035 = dma.hbm_to_vmem [thread:$0]  (!%p2587_p6), %s3255_s5, 1024, %s2593_s17, [#allocation12], %s3237_s20, %s3237_s20, %s3239_s21  }
  0x3f   : > { %p2316_p13 = pneg %p2315_p12 }
  0x41   : > { %p2323_p8 = pnand %p2322_p5, %p2316_p13 }
  0x43   : > { %2326 = shalt.err (!%p2323_p8)
}
  0x44   : > { %s2497_s22 = smov 128   ;;  %s2498_s23 = smov 8  }
  0x45   : > { %s3256_s4 = sld [smem:[#allocation25_spill]]  ;;  %s2499_s25 = smov [#allocation13]  }
  0x46   : > { %s305_s26 = sshll.u32 %s2499_s25, 4  ;;  %s306_s26 = int_to_ptr.vmem [resolvable:$true] %s305_s26 }
  0x47   : > { %s2338_s9 = scalar_lea.vmem %s306_s26, 1024  ;;  %p2346_p12 = scmp.lt.s32.totalorder %s306_s26, %s306_s26 }
  0x48   : > { %p2339_p9 = scmp.ne.s32.totalorder %s306_s26, %s2338_s9  ;;  %p2347_p13 = scmp.lt.s32.totalorder %s2338_s9, %s2338_s9 }
  0x4a   : > { %p2341_p10 = pnand %p2339_p9, %p2597_p7  ;;  %p2348_p0 = por %p2347_p13, %p2346_p12 }
  0x4b   : > { %2032 = dma.hbm_to_vmem [thread:$0]  (!%p2587_p6), %s3256_s4, 256, %s277_s16, [#allocation9], %s2497_s22, %s2497_s22, %s2498_s23  }
  0x4c   : > { %p2342_p11 = pneg %p2341_p10 }
  0x4e   : > { %p2349_p2 = pnand %p2348_p0, %p2342_p11 }
  0x50   : > { %2352 = shalt.err (!%p2349_p2)
}
  0x51   : > { %s3257_s7 = sld [smem:[#allocation27_spill]]  ;;  %s1773_s15 = sadd.s32 4294967294, %s2489_s30  }
  0x52   : > { %s2660_s18 = sadd.s32 1, %s2489_s30   ;;  %s36_s14 = sadd.s32 1, %s2485_s29 }
  0x53   : > { %s33_s16 = ssub.s32 %s2489_s30, %s2660_s18  ;;  %p43_p7 = scmp.ne.s32.totalorder %s2485_s29, %s2481_s28 }
  0x54   : > { %p34_p5 = scmp.eq.s32.totalorder %s33_s16, 0  ;;  %p44_p8 = scmp.eq.s32.totalorder %s2489_s30, 0 }
  0x55   : > { %p49_p9 = scmp.ne.s32.totalorder %s2481_s28, %s2477_s27  ;;  %p225_p10 = scmp.eq.s32.totalorder %s2573_s11, 1 }
  0x56   : > { %s2672_s19 = scalar_select %p34_p5, %s2485_s29, %s36_s14  }
  0x57   : > { %2038 = dma.hbm_to_vmem [thread:$0]  (!%p2587_p6), %s3257_s7, 1024, %s306_s26, [#allocation12], %s3237_s20, %s3237_s20, %s3239_s21  }
  0x58   : > { %3258 = sst [smem:[#allocation21_spill]] %s2672_s19  ;;  %p45_p11 = por %p44_p8, %p43_p7 }
  0x59   : > { %p2676_p12 = por %p3241_p1, %p49_p9  ;;  %p2680_p6 = por %p225_p10, %p43_p7 }
  0x5a   : > { %p231_p13 = scmp.eq.s32.totalorder %s1773_s15, 1  ;;  %p2055_p0 = scmp.lt.s32.totalorder %s2489_s30, 2 }
  0x5b   : > { %s3259_s22 = scalar_select %p2676_p12, 1, 0 }
  0x5c   : > { %s3260_s23 = scalar_select %p2680_p6, 1, 0 }
  0x5d   : > { %s319_s24 = sand.u32 1, %s2485_s29   ;;  %p2686_p2 = por %p231_p13, %p49_p9 }
  0x5e   : > { %s2690_s25 = sshll.u32 %s319_s24, 5  ;;  %s1850_s26 = sshll.u32 %s2489_s30, 9 }
  0x5f   : > { %s3261_s17 = scalar_select %p2686_p2, 1, 0 }
  0x60   : > { %s3262_s0 = sld [smem:[#allocation22_spill]]  ;;  %s323_s14 = scalar_lea.vmem [#allocation2], %s2690_s25 }
  0x61   : > { %s330_s15 = sshll.u32 %s323_s14, 4  ;;  %p2699_p7 = pnand %p2055_p0, %p45_p11  ;;  %s2703_s15 = int_to_ptr.vmem [resolvable:$true] %s330_s15 }
  0x62   : > { %s2708_s2 = scalar_lea.hbm %s3229_s1, %s1850_s26  ;;  %s2710_s9 = scalar_lea.sflag [#allocation3], %s319_s24 }
  0x63   : > { %p2355_p8 = pneg %p2699_p7 }
  0x66   : > { %s2696_s13 = scalar_lea.hbm %s3262_s0, %s1850_s26  ;;  %s2358_s4 = scalar_lea.hbm %s3262_s0, 1024 }
  0x67   : > { %s2353_s10 = scalar_lea.hbm %s2696_s13, 512  ;;  %p2359_p11 = scmp.lt.s32.totalorder %s2696_s13, %s3262_s0 }
  0x68   : > { %p2354_p5 = scmp.ne.s32.totalorder %s2696_s13, %s2353_s10  ;;  %p2360_p13 = scmp.lt.s32.totalorder %s2358_s4, %s2353_s10 }
  0x6a   : > { %p2356_p9 = pnand %p2355_p8, %p2354_p5  ;;  %p2361_p0 = por %p2360_p13, %p2359_p11 }
  0x6c   : > { %p2357_p10 = pneg %p2356_p9 }
  0x6e   : > { %p2362_p4 = pnand %p2361_p0, %p2357_p10 }
  0x70   : > { %2365 = shalt.err (!%p2362_p4)
}
  0x71   : > { %s2366_s20 = scalar_lea.vmem %s2703_s15, 512  ;;  %s2500_s3 = smov [#allocation2]  }
  0x72   : > { %p2367_p1 = scmp.ne.s32.totalorder %s2703_s15, %s2366_s20  ;;  %s2371_s21 = sshll.u32 %s2500_s3, 4  ;;  %s2372_s21 = int_to_ptr.vmem [resolvable:$false] %s2371_s21 }
  0x73   : > { %s2373_s24 = scalar_lea.vmem %s2372_s21, 1024  ;;  %p2374_p2 = scmp.lt.s32.totalorder %s2703_s15, %s2372_s21 }
  0x74   : > { %p2369_p5 = pnand %p2367_p1, %p2355_p8  ;;  %p2375_p6 = scmp.lt.s32.totalorder %s2373_s24, %s2366_s20 }
  0x76   : > { %p2370_p9 = pneg %p2369_p5  ;;  %p2376_p12 = por %p2375_p6, %p2374_p2 }
  0x78   : > { %p2377_p11 = pnand %p2376_p12, %p2370_p9 }
  0x7a   : > { %2380 = shalt.err (!%p2377_p11)
}
  0x7b   : > { %s3264_s4 = smov 4   ;;  %s3265_s5 = smov 64  }
  0x7c   : > { %2042 = dma.hbm_to_vmem [thread:$0]  (!%p2699_p7), %s2696_s13, 512, %s2703_s15, %s2710_s9, %s3265_s5, %s3265_s5, %s3264_s4  }
  0x7d   : > { %s344_s7 = scalar_lea.vmem [#allocation5], %s2690_s25  ;;  %s340_s10 = sand.u32 1, %s2489_s30  }
  0x7e   : > { %s351_s26 = sshll.u32 %s344_s7, 4  ;;  %s341_s14 = scalar_lea.sflag [#allocation6], %s340_s10  ;;  %s2742_s26 = int_to_ptr.vmem [resolvable:$true] %s351_s26 }
  0x7f   : > { %s2381_s20 = scalar_lea.hbm %s2708_s2, 512  ;;  %s2386_s24 = scalar_lea.hbm %s3229_s1, 1024 }
  0x80   : > { %p2382_p1 = scmp.ne.s32.totalorder %s2708_s2, %s2381_s20  ;;  %p2387_p6 = scmp.lt.s32.totalorder %s2708_s2, %s3229_s1 }
  0x81   : > { %p2388_p2 = scmp.lt.s32.totalorder %s2386_s24, %s2381_s20 }
  0x82   : > { %p2384_p4 = pnand %p2382_p1, %p2355_p8 }
  0x83   : > { %p2389_p10 = por %p2388_p2, %p2387_p6 }
  0x84   : > { %p2385_p12 = pneg %p2384_p4 }
  0x86   : > { %p2390_p13 = pnand %p2389_p10, %p2385_p12 }
  0x88   : > { %2393 = shalt.err (!%p2390_p13)
}
  0x89   : > { %s2394_s25 = scalar_lea.vmem %s2742_s26, 512  ;;  %s2501_s13 = smov [#allocation5]  }
  0x8a   : > { %p2395_p0 = scmp.ne.s32.totalorder %s2742_s26, %s2394_s25  ;;  %s2399_s15 = sshll.u32 %s2501_s13, 4  ;;  %s2400_s15 = int_to_ptr.vmem [resolvable:$false] %s2399_s15 }
  0x8b   : > { %s2401_s9 = scalar_lea.vmem %s2400_s15, 1024  ;;  %p2402_p11 = scmp.lt.s32.totalorder %s2742_s26, %s2400_s15 }
  0x8c   : > { %p2397_p5 = pnand %p2395_p0, %p2355_p8  ;;  %p2403_p1 = scmp.lt.s32.totalorder %s2401_s9, %s2394_s25 }
  0x8e   : > { %p2398_p9 = pneg %p2397_p5  ;;  %p2404_p4 = por %p2403_p1, %p2402_p11 }
  0x90   : > { %p2405_p6 = pnand %p2404_p4, %p2398_p9 }
  0x92   : > { %2408 = shalt.err (!%p2405_p6)
}
  0x93   : > { %2045 = dma.hbm_to_vmem [thread:$0]  (!%p2699_p7), %s2708_s2, 512, %s2742_s26, %s341_s14, %s3265_s5, %s3265_s5, %s3264_s4  }
  0x94   : > { %363 = sbr.rel (%p2578_p3) target bundleno = 1153 (0x481), region = 52  ;;  %s2772_s0 = sand.u32 (!%p2578_p3), 1, %s2481_s28  }
  0x95   : > { %s1788_s19 = sshll.u32 (!%p2578_p3), %s2772_s0, 5  ;;  %s366_s7 = scalar_lea.sflag (!%p2578_p3), [#allocation3], %s2772_s0 }
  0x96   : > { %s2776_s10 = scalar_lea.vmem (!%p2578_p3), [#allocation2], %s1788_s19  ;;  %p3266_p8 = scmp.ne.s32.totalorder (!%p2578_p3), %s3259_s22, 0 }
  0x99   : > { %2452 = dma.done.wait (%p3266_p8), %s366_s7, 512  }
  0x9a   : > { %2454 = vsyncadd (%p3266_p8), %s366_s7, 4294966784  ;;  %s374_s2 = sand.u32 1, %s2573_s11   ;;  %s2783_s16 = scalar_lea.vmem [#allocation5], %s1788_s19 }
  0x9b   : > { %s375_s12 = scalar_lea.sflag [#allocation6], %s374_s2 }
  0x9c   : > { %2456 = dma.done.wait (%p3266_p8), %s375_s12, 512  }
  0x9d   : > { %2458 = vsyncadd (%p3266_p8), %s375_s12, 4294966784  ;;  %p3267_p3 = scmp.eq.s32.totalorder %s2573_s11, 0 }
  0x9f   : > { %2460 = dma.done.wait (%p3267_p3), [#allocation6], 1024   ;;  %p3268_p7 = pmov %p3267_p3 }
  0xa0   : > { %p3269_p12 = pmov %p3267_p3 }
  0xa1   : > { %2462 = vsyncadd (%p3268_p7), [#allocation6], 4294966272 }
  0xa2   : > { %2464 = dma.done.wait (%p3269_p12), [#allocation9], 1280   ;;  %p3270_p2 = pmov %p3267_p3 }
  0xa4   : > { %2466 = vsyncadd (%p3270_p2), [#allocation9], 4294966016  ;;  %p3271_p10 = pmov %p3270_p2 }
  0xa5   : > { %p3272_p13 = pmov %p3270_p2 }
  0xa6   : > { %2468 = dma.done.wait (%p3271_p10), [#allocation12], 2048  }
  0xa7   : > { %2470 = vsyncadd (%p3272_p13), [#allocation12], 4294965248  ;;  %v2107_v0 = vld [vmem:[#allocation8 + $0x38] sm:$0xff]   ;;  %v2109_v2 = vld [vmem:[#allocation8 + $0x30] sm:$0xff]   ;;  %s1795_s5 = sshll.u32 %s2772_s0, 6  ;;  %s1852_s14 = sshll.u32 %s2573_s11, 10 }
  0xa8   : > { %v2108_v1 = vld [vmem:[#allocation7 + $0x38] sm:$0xff]   ;;  %1901 = vmatprep.subr.bf16.mxu0 %v2107_v0  ;;  %v2110_v3 = vld [vmem:[#allocation7 + $0x30] sm:$0xff]   ;;  %v2111_v4 = vld [vmem:[#allocation8 + $0x28] sm:$0xff]   ;;  %s3141_s26 = scalar_lea.vmem [#allocation14], %s1795_s5  ;;  %s3180_s24 = scalar_lea.hbm %s3236_s8, %s1852_s14 }
  0xa9   : > { %1925 = vmatprep.subr.bf16.mxu1 %v2108_v1  ;;  %1902 = vmatpush3.bf16.msra.mxu0 %v2107_v0  ;;  %v2112_v5 = vld [vmem:[#allocation7 + $0x28] sm:$0xff]   ;;  %v2113_v6 = vld [vmem:[#allocation8 + $0x20] sm:$0xff]   ;;  %v2115_v8 = vld [vmem:[#allocation8 + $0x18] sm:$0xff]   ;;  %s1630_s20 = sshll.u32 %s3141_s26, 4  ;;  %s1617_s11 = scalar_lea.sflag [#allocation4], %s2772_s0  ;;  %s3182_s20 = int_to_ptr.vmem [resolvable:$true] %s1630_s20 }
  0xaa   : > { %1926 = vmatpush3.bf16.msra.mxu1 %v2108_v1  ;;  %1903 = vmatprep.subr.bf16.mxu0 %v2109_v2  ;;  %v2114_v7 = vld [vmem:[#allocation7 + $0x20] sm:$0xff]   ;;  %v2116_v9 = vld [vmem:[#allocation7 + $0x18] sm:$0xff]   ;;  %v2117_v10 = vld [vmem:[#allocation8 + $0x10] sm:$0xff]   ;;  %s2409_s25 = scalar_lea.vmem %s3182_s20, 1024  ;;  %p3273_p5 = scmp.ne.s32.totalorder %s3260_s23, 0 }
  0xab   : > { %1927 = vmatprep.subr.bf16.mxu1 %v2110_v3  ;;  %v448_v11 = vld [vmem:[%s2783_s16] sm:$0xff]   ;;  %v2118_v13 = vld [vmem:[#allocation7 + $0x10] sm:$0xff]   ;;  %v450_v16 = vld [vmem:[%s2783_s16 + $0x8] sm:$0xff]   ;;  %p2410_p0 = scmp.ne.s32.totalorder %s3182_s20, %s2409_s25  ;;  %s2504_s13 = smov [#allocation14]  }
  0xac   : > { %v440_v12 = vld [vmem:[%s2776_s10] sm:$0xff]   ;;  %v960_v14 = vunpack.c.l.bf16 %v448_v11  ;;  %v961_v15 = vunpack.c.h.bf16 %v448_v11  ;;  %v2119_v17 = vld [vmem:[#allocation8 + $0x8] sm:$0xff]   ;;  %v962_v20 = vunpack.c.l.bf16 %v450_v16  ;;  %1917 = vmatprep.mubr.bf16.mxu0 %v448_v11  ;;  %v963_v23 = vunpack.c.h.bf16 %v450_v16  ;;  %v452_v32 = vld [vmem:[%s2783_s16 + $0x10] sm:$0xff]   ;;  %s2413_s15 = sshll.u32 %s2504_s13, 4  ;;  %s2414_s15 = int_to_ptr.vmem [resolvable:$false] %s2413_s15 }
  0xad   : > { %1904 = vmatpush3.bf16.msra.mxu0 %v2109_v2  ;;  %v952_v18 = vunpack.c.l.bf16 %v440_v12  ;;  %v953_v19 = vunpack.c.h.bf16 %v440_v12  ;;  %v442_v21 = vld [vmem:[%s2776_s10 + $0x8] sm:$0xff]   ;;  %1941 = vmatprep.mubr.bf16.mxu1 %v440_v12  ;;  %v2121_v30 = vld [vmem:[#allocation8] sm:$0xff]   ;;  %v444_v33 = vld [vmem:[%s2776_s10 + $0x10] sm:$0xff]   ;;  %v964_v44 = vunpack.c.l.bf16 %v452_v32  ;;  %v965_v45 = vunpack.c.h.bf16 %v452_v32  ;;  %p2411_p9 = pnand %p2410_p0, %p3273_p5  ;;  %s2415_s9 = scalar_lea.vmem %s2414_s15, 2048 }
  0xae   : > { %1928 = vmatpush3.bf16.msra.mxu1 %v2110_v3  ;;  %1905 = vmatprep.subr.bf16.mxu0 %v2111_v4  ;;  %v2120_v22 = vld [vmem:[#allocation7 + $0x8] sm:$0xff]   ;;  %v954_v24 = vunpack.c.l.bf16 %v442_v21  ;;  %v955_v25 = vunpack.c.h.bf16 %v442_v21  ;;  %v2122_v31 = vld [vmem:[#allocation7] sm:$0xff]   ;;  %v454_v34 = vld [vmem:[%s2783_s16 + $0x18] sm:$0xff]   ;;  %v956_v46 = vunpack.c.l.bf16 %v444_v33  ;;  %v957_v47 = vunpack.c.h.bf16 %v444_v33  ;;  %p2416_p1 = scmp.lt.s32.totalorder %s3182_s20, %s2414_s15  ;;  %p2417_p4 = scmp.lt.s32.totalorder %s2415_s9, %s2409_s25 }
  0xaf   : > { %1929 = vmatprep.subr.bf16.mxu1 %v2112_v5  ;;  %v2805_v26 = vadd.f32 %v960_v14, %v952_v18  ;;  %v2807_v27 = vadd.f32 %v961_v15, %v953_v19  ;;  %v446_v35 = vld [vmem:[%s2776_s10 + $0x18] sm:$0xff]   ;;  %v2131_v36 = vld [vmem:[#allocation11 + $0x38] sm:$0xff]   ;;  %v2132_v37 = vld [vmem:[#allocation11 + $0x30] sm:$0xff]   ;;  %v966_v48 = vunpack.c.l.bf16 %v454_v34  ;;  %v967_v49 = vunpack.c.h.bf16 %v454_v34  ;;  %p2412_p11 = pneg %p2411_p9 }
  0xb0   : > { %v2809_v28 = vadd.f32 %v962_v20, %v954_v24  ;;  %v2811_v29 = vadd.f32 %v963_v23, %v955_v25  ;;  %v2133_v38 = vld [vmem:[#allocation11 + $0x28] sm:$0xff]   ;;  %v2134_v39 = vld [vmem:[#allocation11 + $0x20] sm:$0xff]   ;;  %v2135_v40 = vld [vmem:[#allocation11 + $0x18] sm:$0xff]   ;;  %v958_v50 = vunpack.c.l.bf16 %v446_v35  ;;  %v959_v51 = vunpack.c.h.bf16 %v446_v35  ;;  %p2418_p6 = por %p2417_p4, %p2416_p1 }
  0xb1   : > { %1906 = vmatpush3.bf16.msra.mxu0 %v2111_v4  ;;  %v2136_v41 = vld [vmem:[#allocation11 + $0x10] sm:$0xff]   ;;  %v2137_v42 = vld [vmem:[#allocation11 + $0x8] sm:$0xff]   ;;  %v2138_v43 = vld [vmem:[#allocation11] sm:$0xff]   ;;  %v2817_v52 = vadd.f32 %v964_v44, %v956_v46  ;;  %v2819_v53 = vadd.f32 %v965_v45, %v957_v47 }
  0xb2   : > { %1930 = vmatpush3.bf16.msra.mxu1 %v2112_v5  ;;  %1907 = vmatprep.subr.bf16.mxu0 %v2113_v6  ;;  %v2821_v54 = vadd.f32 %v966_v48, %v958_v50  ;;  %v2823_v55 = vadd.f32 %v967_v49, %v959_v51  ;;  %v1820_v1 = vld [vmem:[#allocation10 + $0x7] ss:$0 sm:$0xff]  ;;  %p2419_p8 = pnand %p2418_p6, %p2412_p11 }
  0xb3   : > { %1931 = vmatprep.subr.bf16.mxu1 %v2114_v7 }
  0xb5   : > { %1908 = vmatpush3.bf16.msra.mxu0 %v2113_v6 }
  0xb6   : > { %1932 = vmatpush3.bf16.msra.mxu1 %v2114_v7  ;;  %1909 = vmatprep.subr.bf16.mxu0 %v2115_v8 }
  0xb7   : > { %1933 = vmatprep.subr.bf16.mxu1 %v2116_v9 }
  0xb9   : > { %1910 = vmatpush3.bf16.msra.mxu0 %v2115_v8 }
  0xba   : > { %1934 = vmatpush3.bf16.msra.mxu1 %v2116_v9  ;;  %1911 = vmatprep.subr.bf16.mxu0 %v2117_v10 }
  0xbb   : > { %1935 = vmatprep.subr.bf16.mxu1 %v2118_v13 }
  0xbd   : > { %1912 = vmatpush3.bf16.msra.mxu0 %v2117_v10 }
  0xbe   : > { %1936 = vmatpush3.bf16.msra.mxu1 %v2118_v13  ;;  %1913 = vmatprep.subr.bf16.mxu0 %v2119_v17 }
  0xbf   : > { %1937 = vmatprep.subr.bf16.mxu1 %v2120_v22 }
  0xc1   : > { %1914 = vmatpush3.bf16.msra.mxu0 %v2119_v17 }
  0xc2   : > { %1938 = vmatpush3.bf16.msra.mxu1 %v2120_v22  ;;  %1915 = vmatprep.subr.bf16.mxu0 %v2121_v30 }
  0xc3   : > { %1939 = vmatprep.subr.bf16.mxu1 %v2122_v31 }
  0xc5   : > { %1916 = vmatpush3.bf16.msra.mxu0 %v2121_v30 }
  0xc6   : > { %1940 = vmatpush3.bf16.msra.mxu1 %v2122_v31  ;;  %1949 = vmatprep.subr.bf16.mxu0 %v2131_v36 }
  0xc8   : > { %1918 = vmatmul.mubr.bf16.vlgmr.msra.gmra.mxu0 %v450_v16 }
  0xc9   : > { %1942 = vmatmul.mubr.bf16.vlgmr.msra.gmra.mxu1 %v442_v21  ;;  %1921 = vmatprep.mubr.bf16.mxu0 %v452_v32 }
  0xca   : > { %1945 = vmatprep.mubr.bf16.mxu1 %v444_v33  ;;  %1950 = vmatpush3.bf16.msra.mxu0 %v2131_v36 }
  0xcb   : > { %1951 = vmatprep.subr.bf16.mxu0 %v2132_v37 }
  0xce   : > { %1952 = vmatpush3.bf16.msra.mxu0 %v2132_v37 }
  0xcf   : > { %1953 = vmatprep.subr.bf16.mxu0 %v2133_v38 }
  0xd0   : > { %1922 = vmatmul.mubr.bf16.gmra.mxu0 %v454_v34 }
  0xd1   : > { %1946 = vmatmul.mubr.bf16.gmra.mxu1 %v446_v35 }
  0xd2   : > { %1954 = vmatpush3.bf16.msra.mxu0 %v2133_v38 }
  0xd3   : > { %1955 = vmatprep.subr.bf16.mxu0 %v2134_v39 }
  0xd6   : > { %1956 = vmatpush3.bf16.msra.mxu0 %v2134_v39 }
  0xd7   : > { %1957 = vmatprep.subr.bf16.mxu0 %v2135_v40 }
  0xda   : > { %1958 = vmatpush3.bf16.msra.mxu0 %v2135_v40 }
  0xdb   : > { %1959 = vmatprep.subr.bf16.mxu0 %v2136_v41 }
  0xde   : > { %1960 = vmatpush3.bf16.msra.mxu0 %v2136_v41 }
  0xdf   : > { %1961 = vmatprep.subr.bf16.mxu0 %v2137_v42 }
  0xe2   : > { %1962 = vmatpush3.bf16.msra.mxu0 %v2137_v42 }
  0xe3   : > { %1963 = vmatprep.subr.bf16.mxu0 %v2138_v43 }
  0xe6   : > { %1964 = vmatpush3.bf16.msra.mxu0 %v2138_v43 }
 0x188   : > { %v1919_v56 = vpop.f32.mrf.mxu0 }
 0x189   : > { %v1943_v57 = vpop.f32.mrf.mxu1 }
 0x18a   : > { %v594_v58 = vpop.f32.mrf.mxu0  ;;  %v740_v63 = vadd.f32 %v1943_v57, %v1919_v56 }
 0x18b   : > { %v731_v59 = vpop.f32.mrf.mxu1 }
 0x18c   : > { %v732_v60 = vadd.f32 %v731_v59, %v594_v58  ;;  %v1920_v61 = vpop.f32.mrf.mxu0  ;;  %v2827_v8 = vadd.f32 %v1820_v1, %v740_v63 }
 0x18d   : > { %v1944_v62 = vpop.f32.mrf.mxu1 }
 0x18e   : > { %v597_v0 = vpop.f32.mrf.mxu0  ;;  %v743_v2 = vadd.f32 %v1944_v62, %v1920_v61  ;;  %v2825_v4 = vadd.f32 %v1820_v1, %v732_v60  ;;  %v799_v20 = vmul.f32 %v2827_v8, %v2827_v8 }
 0x18f   : > { %v734_v3 = vpop.f32.mrf.mxu1 }
 0x190   : > { %v735_v5 = vadd.f32 %v734_v3, %v597_v0  ;;  %v1923_v6 = vpop.f32.mrf.mxu0  ;;  %v2831_v11 = vadd.f32 %v1820_v1, %v743_v2  ;;  %v797_v13 = vmul.f32 %v2825_v4, %v2825_v4 }
 0x191   : > { %v1947_v7 = vpop.f32.mrf.mxu1 }
 0x192   : > { %v2829_v9 = vadd.f32 %v1820_v1, %v735_v5  ;;  %v610_v10 = vpop.f32.mrf.mxu0  ;;  %v756_v18 = vadd.f32 %v1947_v7, %v1923_v6  ;;  %v800_v25 = vmul.f32 %v2831_v11, %v2831_v11 }
 0x193   : > { %v747_v12 = vpop.f32.mrf.mxu1 }
 0x194   : > { %v782_v14 = vadd.f32 %v2829_v9, %v2825_v4  ;;  %v798_v15 = vmul.f32 %v2829_v9, %v2829_v9  ;;  %v748_v16 = vadd.f32 %v747_v12, %v610_v10  ;;  %v1924_v17 = vpop.f32.mrf.mxu0  ;;  %v2847_v35 = vadd.f32 %v1820_v1, %v756_v18  ;;  %v775_v12 = vld [vmem:[#allocation10] sm:$0x1] }
 0x195   : > { %v1948_v19 = vpop.f32.mrf.mxu1 }
 0x196   : > { %v783_v21 = vadd.f32 %v782_v14, %v2827_v8  ;;  %v805_v22 = vadd.f32 %v798_v15, %v797_v13  ;;  %v2842_v23 = vadd.f32 %v1820_v1, %v748_v16  ;;  %v613_v24 = vpop.f32.mrf.mxu0  ;;  %v759_v33 = vadd.f32 %v1948_v19, %v1924_v17  ;;  %v776_v14 = vld [vmem:[#allocation10 + $0x1] sm:$0x1] }
 0x197   : > { %v750_v30 = vpop.f32.mrf.mxu1  ;;  %v803_v44 = vmul.f32 %v2847_v35, %v2847_v35 }
 0x198   : > { %v806_v31 = vadd.f32 %v805_v22, %v799_v20  ;;  %v784_v32 = vadd.f32 %v783_v21, %v2831_v11  ;;  %v751_v34 = vadd.f32 %v750_v30, %v613_v24  ;;  %v801_v37 = vmul.f32 %v2842_v23, %v2842_v23  ;;  %v1821_v21 = vld [vmem:[#allocation10 + $0x4] ss:$0 sm:$0xff] }
 0x199   : > { %v2854_v41 = vadd.f32 %v1820_v1, %v759_v33 }
 0x19a   : > { %v785_v36 = vadd.f32 %v784_v32, %v2842_v23  ;;  %v807_v38 = vadd.f32 %v806_v31, %v800_v25  ;;  %v2852_v39 = vadd.f32 %v1820_v1, %v751_v34 }
 0x19b   : > { %v804_v47 = vmul.f32 %v2854_v41, %v2854_v41 }
 0x19c   : > { %v808_v40 = vadd.f32 %v807_v38, %v801_v37  ;;  %v786_v42 = vadd.f32 %v785_v36, %v2852_v39  ;;  %v802_v43 = vmul.f32 %v2852_v39, %v2852_v39  ;;  %v1822_v36 = vld [vmem:[#allocation10 + $0x5] ss:$0 sm:$0xff] }
 0x19e   : > { %v787_v45 = vadd.f32 %v786_v42, %v2847_v35  ;;  %v809_v46 = vadd.f32 %v808_v40, %v802_v43 }
 0x1a0   : > { %v788_v48 = vadd.f32 %v787_v45, %v2854_v41  ;;  %v810_v49 = vadd.f32 %v809_v46, %v803_v44 }
 0x1a2   : > { %v789_v50 = vrot.slane %v788_v48, 4  ;;  %v811_v51 = vadd.f32 %v810_v49, %v804_v47  ;;  %v1823_v47 = vld [vmem:[#allocation10 + $0x2] ss:$0 sm:$0xff] }
 0x1a4   : > { %v790_v56 = vadd.f32 %v789_v50, %v788_v48  ;;  %v812_v57 = vrot.slane %v811_v51, 4 }
 0x1a6   : > { %v791_v58 = vrot.slane %v790_v56, 2  ;;  %v813_v59 = vadd.f32 %v812_v57, %v811_v51 }
 0x1a8   : > { %v792_v60 = vadd.f32 %v791_v58, %v790_v56  ;;  %v814_v61 = vrot.slane %v813_v59, 2 }
 0x1aa   : > { %v793_v62 = vrot.slane %v792_v60, 1  ;;  %v815_v63 = vadd.f32 %v814_v61, %v813_v59  ;;  %v1824_v59 = vld [vmem:[#allocation10 + $0x3] ss:$0 sm:$0xff] }
 0x1ac   : > { %v794_v0 = vadd.f32 %v793_v62, %v792_v60  ;;  %v816_v1 = vrot.slane %v815_v63, 1 }
 0x1ae   : > { %v796_v2 = vmul.f32 0.015625, %v794_v0  ;;  %v817_v3 = vadd.f32 %v816_v1, %v815_v63 }
 0x1b0   : > { %v818_v5 = vmul.f32 0.015625, %v817_v3  ;;  %v819_v6 = vmul.f32 %v796_v2, %v796_v2  ;;  %v863_v13 = vmul.f32 %v796_v2, %v775_v12  ;;  %v826_v16 = vsub.f32 %v2852_v39, %v796_v2 }
 0x1b1   : > { %v821_v17 = vsub.f32 %v2825_v4, %v796_v2  ;;  %v822_v18 = vsub.f32 %v2829_v9, %v796_v2  ;;  %v823_v19 = vsub.f32 %v2827_v8, %v796_v2  ;;  %v824_v24 = vsub.f32 %v2831_v11, %v796_v2 }
 0x1b2   : > { %v820_v7 = vsub.f32 %v818_v5, %v819_v6  ;;  %v864_v15 = vadd.f32 %v863_v13, %v776_v14  ;;  %v825_v25 = vsub.f32 %v2842_v23, %v796_v2  ;;  %v827_v30 = vsub.f32 %v2847_v35, %v796_v2 }
 0x1b3   : > { %v828_v40 = vsub.f32 %v2854_v41, %v796_v2 }
 0x1b4   : > { %v829_v10 = vadd.f32 1e-05, %v820_v7  ;;  %v865_v22 = vmul.f32 0.5, %v864_v15 }
 0x1b6   : > { %2155 = vrsqrt.f32 %v829_v10 }
 0x1b7   : > { %2157 = vtanh.f32 %v865_v22 }
 0x1c3   : > { %v2156_v20 = vpop.eup %2155 }
 0x1c4   : > { %v836_v31 = vmul.f32 %v2156_v20, %v826_v16  ;;  %v831_v32 = vmul.f32 %v2156_v20, %v821_v17  ;;  %v832_v33 = vmul.f32 %v2156_v20, %v822_v18  ;;  %v833_v34 = vmul.f32 %v2156_v20, %v823_v19 }
 0x1c5   : > { %v834_v37 = vmul.f32 %v2156_v20, %v824_v24  ;;  %v835_v38 = vmul.f32 %v2156_v20, %v825_v25  ;;  %v837_v42 = vmul.f32 %v2156_v20, %v827_v30  ;;  %v838_v50 = vmul.f32 %v2156_v20, %v828_v40  ;;  %v2158_v40 = vpop.eup %2157 }
 0x1c6   : > { %v848_v43 = vmul.f32 %v1821_v21, %v836_v31  ;;  %v843_v44 = vmul.f32 %v1821_v21, %v831_v32  ;;  %v844_v45 = vmul.f32 %v1821_v21, %v832_v33  ;;  %v845_v46 = vmul.f32 %v1821_v21, %v833_v34  ;;  %v781_v34 = vld [vmem:[#allocation10 + $0x6] sm:$0x1] }
 0x1c7   : > { %v846_v48 = vmul.f32 %v1821_v21, %v834_v37  ;;  %v847_v49 = vmul.f32 %v1821_v21, %v835_v38  ;;  %v849_v62 = vmul.f32 %v1821_v21, %v837_v42  ;;  %v850_v6 = vmul.f32 %v1821_v21, %v838_v50 }
 0x1c8   : > { %v860_v51 = vadd.f32 %v1822_v36, %v848_v43  ;;  %v855_v56 = vadd.f32 %v1822_v36, %v843_v44  ;;  %v856_v57 = vadd.f32 %v1822_v36, %v844_v45  ;;  %v857_v58 = vadd.f32 %v1822_v36, %v845_v46 }
 0x1c9   : > { %v858_v60 = vadd.f32 %v1822_v36, %v846_v48  ;;  %v859_v61 = vadd.f32 %v1822_v36, %v847_v49  ;;  %v861_v7 = vadd.f32 %v1822_v36, %v849_v62  ;;  %v862_v17 = vadd.f32 %v1822_v36, %v850_v6 }
 0x1ca   : > { %v878_v63 = vmul.f32 %v1823_v47, %v860_v51  ;;  %v873_v0 = vmul.f32 %v1823_v47, %v855_v56  ;;  %v874_v1 = vmul.f32 %v1823_v47, %v856_v57  ;;  %v875_v2 = vmul.f32 %v1823_v47, %v857_v58 }
 0x1cb   : > { %v876_v3 = vmul.f32 %v1823_v47, %v858_v60  ;;  %v877_v5 = vmul.f32 %v1823_v47, %v859_v61  ;;  %v879_v18 = vmul.f32 %v1823_v47, %v861_v7  ;;  %v880_v25 = vmul.f32 %v1823_v47, %v862_v17 }
 0x1cc   : > { %v885_v10 = vadd.f32 %v1824_v59, %v873_v0  ;;  %v886_v12 = vadd.f32 %v1824_v59, %v874_v1  ;;  %v887_v13 = vadd.f32 %v1824_v59, %v875_v2  ;;  %v890_v14 = vadd.f32 %v1824_v59, %v878_v63 }
 0x1cd   : > { %v888_v15 = vadd.f32 %v1824_v59, %v876_v3  ;;  %v889_v16 = vadd.f32 %v1824_v59, %v877_v5  ;;  %v891_v30 = vadd.f32 %v1824_v59, %v879_v18  ;;  %v927_v32 = vlaneseq }
 0x1ce   : > { %v893_v19 = vmul.f32 0.5, %v885_v10  ;;  %v894_v20 = vmul.f32 0.5, %v886_v12  ;;  %v895_v22 = vmul.f32 0.5, %v887_v13  ;;  %v898_v21 = vmul.f32 0.5, %v890_v14 }
 0x1cf   : > { %v896_v24 = vmul.f32 0.5, %v888_v15  ;;  %v897_v31 = vmul.f32 0.5, %v889_v16  ;;  %v892_v33 = vadd.f32 %v1824_v59, %v880_v25  ;;  %v899_v37 = vmul.f32 0.5, %v891_v30 }
 0x1d0   : > { %2159 = vtanh.f32 %v893_v19  ;;  %vm925_vm0 = vcmp.ne.f32.partialorder %v781_v34, 0.0  ;;  %v928_v36 = vshrl.u32 %v927_v32, 7  ;;  %v867_v42 = vadd.f32 1.0, %v2158_v40 }
 0x1d1   : > { %2161 = vtanh.f32 %v894_v20  ;;  %v900_v38 = vmul.f32 0.5, %v892_v33  ;;  %v2502_v43 = vmov 0  }
 0x1d2   : > { %2163 = vtanh.f32 %v895_v22  ;;  %v926_v44 = vsel %vm925_vm0, 1, %v2502_v43  ;;  %v929_v45 = vsub.s32 0, %v928_v36  ;;  %v868_v47 = vmul.f32 0.5, %v867_v42  ;;  %v2139_v36 = vld [vmem:[#allocation13 + $0x38] sm:$0xff]   ;;  %v2142_v42 = vld [vmem:[#allocation13 + $0x20] sm:$0xff]   ;;  %v2145_v43 = vld [vmem:[#allocation13 + $0x8] sm:$0xff]  }
 0x1d3   : > { %2165 = vtanh.f32 %v896_v24  ;;  %1973 = vmatprep.subr.bf16.mxu1 %v2139_v36 }
 0x1d4   : > { %2167 = vtanh.f32 %v897_v31  ;;  %v930_v46 = vrot.slane %v926_v44, %v929_v45  ;;  %v935_v59 = vrot.slane %v868_v47, %v929_v45  ;;  %1974 = vmatpush3.bf16.msra.mxu1 %v2139_v36  ;;  %v2146_v44 = vld [vmem:[#allocation13] sm:$0xff]   ;;  %v1825_v45 = vld [vmem:[%s3234_s6] ss:$0 sm:$0xff] }
 0x1d5   : > { %2169 = vtanh.f32 %v898_v21 }
 0x1d6   : > { %2171 = vtanh.f32 %v899_v37  ;;  %vm931_vm1 = vcmp.eq.s32.totalorder %v930_v46, 1 }
 0x1d7   : > { %2173 = vtanh.f32 %v900_v38 }
 0x1dd   : > { %v2160_v48 = vpop.eup %2159 }
 0x1de   : > { %v2162_v49 = vpop.eup %2161  ;;  %v909_v50 = vadd.f32 1.0, %v2160_v48 }
 0x1df   : > { %v2164_v51 = vpop.eup %2163  ;;  %v910_v56 = vadd.f32 1.0, %v2162_v49 }
 0x1e0   : > { %v2166_v57 = vpop.eup %2165  ;;  %v917_v58 = vmul.f32 0.5, %v909_v50  ;;  %v911_v60 = vadd.f32 1.0, %v2164_v51 }
 0x1e1   : > { %v2168_v61 = vpop.eup %2167  ;;  %v918_v62 = vmul.f32 0.5, %v910_v56  ;;  %v912_v63 = vadd.f32 1.0, %v2166_v57 }
 0x1e2   : > { %v2170_v0 = vpop.eup %2169  ;;  %v936_v1 = vsel %vm931_vm1, %v935_v59, %v917_v58  ;;  %v919_v2 = vmul.f32 0.5, %v911_v60  ;;  %v913_v3 = vadd.f32 1.0, %v2168_v61 }
 0x1e3   : > { %v2172_v5 = vpop.eup %2171  ;;  %v937_v6 = vsel %vm931_vm1, %v935_v59, %v918_v62  ;;  %v944_v7 = vmul.f32 %v936_v1, %v2825_v4  ;;  %v920_v10 = vmul.f32 0.5, %v912_v63  ;;  %v914_v12 = vadd.f32 1.0, %v2170_v0 }
 0x1e4   : > { %v2174_v13 = vpop.eup %2173  ;;  %v945_v14 = vmul.f32 %v937_v6, %v2829_v9  ;;  %v938_v15 = vsel %vm931_vm1, %v935_v59, %v919_v2  ;;  %v921_v16 = vmul.f32 0.5, %v913_v3  ;;  %v915_v17 = vadd.f32 1.0, %v2172_v5 }
 0x1e5   : > { %v2879_v18 = vmul.f32 %v2805_v26, %v944_v7  ;;  %v939_v19 = vsel %vm931_vm1, %v935_v59, %v920_v10  ;;  %v946_v20 = vmul.f32 %v938_v15, %v2827_v8  ;;  %v922_v22 = vmul.f32 0.5, %v914_v12 }
 0x1e6   : > { %v2884_v24 = vmul.f32 %v2807_v27, %v945_v14  ;;  %v947_v4 = vmul.f32 %v939_v19, %v2831_v11  ;;  %v940_v25 = vsel %vm931_vm1, %v935_v59, %v921_v16  ;;  %v916_v9 = vadd.f32 1.0, %v2174_v13 }
 0x1e7   : > { %v2889_v30 = vmul.f32 %v2809_v28, %v946_v20  ;;  %v941_v31 = vsel %vm931_vm1, %v935_v59, %v922_v22  ;;  %v948_v26 = vmul.f32 %v940_v25, %v2842_v23  ;;  %v923_v32 = vmul.f32 0.5, %v915_v17 }
 0x1e8   : > { %v984_v8 = vpack.c.bf16 %v2884_v24, %v2879_v18  ;;  %v2896_v21 = vmul.f32 %v2811_v29, %v947_v4  ;;  %v949_v27 = vmul.f32 %v941_v31, %v2852_v39  ;;  %v924_v11 = vmul.f32 0.5, %v916_v9 }
 0x1e9   : > { %v2900_v33 = vmul.f32 %v2817_v52, %v948_v26  ;;  %v942_v28 = vsel %vm931_vm1, %v935_v59, %v923_v32 }
 0x1ea   : > { %1965 = vmatprep.mubr.bf16.mxu0 %v984_v8  ;;  %v985_v34 = vpack.c.bf16 %v2896_v21, %v2889_v30  ;;  %v2906_v23 = vmul.f32 %v2819_v53, %v949_v27  ;;  %v943_v37 = vsel %vm931_vm1, %v935_v59, %v924_v11  ;;  %v950_v29 = vmul.f32 %v942_v28, %v2847_v35  ;;  %v2140_v35 = vld [vmem:[#allocation13 + $0x30] sm:$0xff]  }
 0x1eb   : > { %v951_v38 = vmul.f32 %v943_v37, %v2854_v41  ;;  %1975 = vmatprep.subr.bf16.mxu1 %v2140_v35  ;;  %v2141_v41 = vld [vmem:[#allocation13 + $0x28] sm:$0xff]  }
 0x1ec   : > { %1966 = vmatmul.mubr.bf16.vlgmr.msra.gmra.mxu0 %v985_v34  ;;  %v986_v52 = vpack.c.bf16 %v2906_v23, %v2900_v33  ;;  %v2914_v39 = vmul.f32 %v2821_v54, %v950_v29  ;;  %1976 = vmatpush3.bf16.msra.mxu1 %v2140_v35  ;;  %v2143_v54 = vld [vmem:[#allocation13 + $0x18] sm:$0xff]  }
 0x1ed   : > { %v2917_v40 = vmul.f32 %v2823_v55, %v951_v38  ;;  %1977 = vmatprep.subr.bf16.mxu1 %v2141_v41  ;;  %v2144_v55 = vld [vmem:[#allocation13 + $0x10] sm:$0xff]  }
 0x1ee   : > { %1969 = vmatprep.mubr.bf16.mxu0 %v986_v52 }
 0x1ef   : > { %v987_v53 = vpack.c.bf16 %v2917_v40, %v2914_v39 }
 0x1f0   : > { %1978 = vmatpush3.bf16.msra.mxu1 %v2141_v41 }
 0x1f1   : > { %1979 = vmatprep.subr.bf16.mxu1 %v2142_v42 }
 0x1f4   : > { %1970 = vmatmul.mubr.bf16.gmra.mxu0 %v987_v53  ;;  %1980 = vmatpush3.bf16.msra.mxu1 %v2142_v42 }
 0x1f5   : > { %1981 = vmatprep.subr.bf16.mxu1 %v2143_v54 }
 0x1f8   : > { %1982 = vmatpush3.bf16.msra.mxu1 %v2143_v54 }
 0x1f9   : > { %1983 = vmatprep.subr.bf16.mxu1 %v2144_v55 }
 0x1fc   : > { %1984 = vmatpush3.bf16.msra.mxu1 %v2144_v55 }
 0x1fd   : > { %1985 = vmatprep.subr.bf16.mxu1 %v2145_v43 }
 0x200   : > { %1986 = vmatpush3.bf16.msra.mxu1 %v2145_v43 }
 0x201   : > { %1987 = vmatprep.subr.bf16.mxu1 %v2146_v44 }
 0x204   : > { %1988 = vmatpush3.bf16.msra.mxu1 %v2146_v44 }
 0x2ac   : > { %v1967_v46 = vpop.f32.mrf.mxu0 }
 0x2ad   : > { %v2924_v47 = vadd.f32 %v1967_v46, %v1825_v45 }
 0x2ae   : > { %v1093_v48 = vpop.f32.mrf.mxu0 }
 0x2af   : > { %v2927_v49 = vmul.f32 0.70710677, %v2924_v47  ;;  %v2929_v50 = vadd.f32 %v1825_v45, %v1093_v48 }
 0x2b0   : > { %v1968_v51 = vpop.f32.mrf.mxu0 }
 0x2b1   : > { %v1158_v56 = vand.u32 2147483647, %v2927_v49  ;;  %v2933_v57 = vmul.f32 0.70710677, %v2929_v50  ;;  %v2935_v58 = vadd.f32 %v1968_v51, %v1825_v45  ;;  %vm1142_vm2 = vcmp.ge.f32.partialorder %v2927_v49, 0.0 }
 0x2b2   : > { %v1096_v59 = vpop.f32.mrf.mxu0 }
 0x2b3   : > { %v1166_v60 = vmul.f32 0.3275911, %v1158_v56  ;;  %v1156_v61 = vand.u32 2147483647, %v2933_v57  ;;  %v2939_v62 = vmul.f32 0.70710677, %v2935_v58  ;;  %v2941_v63 = vadd.f32 %v1825_v45, %v1096_v59 }
 0x2b4   : > { %v1971_v0 = vpop.f32.mrf.mxu0  ;;  %v1262_v19 = vsub.f32 0.0, %v1158_v56  ;;  %vm1140_vm3 = vcmp.ge.f32.partialorder %v2933_v57, 0.0 }
 0x2b5   : > { %v1174_v1 = vadd.f32 1.0, %v1166_v60  ;;  %v1164_v2 = vmul.f32 0.3275911, %v1156_v61  ;;  %v1159_v3 = vand.u32 2147483647, %v2939_v62  ;;  %v2948_v14 = vadd.f32 %v1971_v0, %v1825_v45 }
 0x2b6   : > { %v2945_v5 = vmul.f32 0.70710677, %v2941_v63  ;;  %v1109_v6 = vpop.f32.mrf.mxu0  ;;  %v1260_v25 = vsub.f32 0.0, %v1156_v61  ;;  %v1270_v32 = vmul.f32 %v1262_v19, %v1158_v56  ;;  %vm1143_vm4 = vcmp.ge.f32.partialorder %v2939_v62, 0.0 }
 0x2b7   : > { %2175 = vrcp.f32 %v1174_v1  ;;  %v1172_v7 = vadd.f32 1.0, %v1164_v2  ;;  %v1167_v10 = vmul.f32 0.3275911, %v1159_v3  ;;  %v2950_v17 = vadd.f32 %v1825_v45, %v1109_v6 }
 0x2b8   : > { %v1157_v12 = vand.u32 2147483647, %v2945_v5  ;;  %v1972_v15 = vpop.f32.mrf.mxu0  ;;  %v2953_v20 = vmul.f32 0.70710677, %v2948_v14  ;;  %v1263_v11 = vsub.f32 0.0, %v1159_v3  ;;  %v1268_v37 = vmul.f32 %v1260_v25, %v1156_v61 }
 0x2b9   : > { %2177 = vrcp.f32 %v1172_v7  ;;  %v1175_v13 = vadd.f32 1.0, %v1167_v10  ;;  %v2956_v4 = vmul.f32 0.70710677, %v2950_v17  ;;  %v2959_v31 = vadd.f32 %v1972_v15, %v1825_v45 }
 0x2ba   : > { %v1165_v16 = vmul.f32 0.3275911, %v1157_v12  ;;  %v1162_v9 = vand.u32 2147483647, %v2953_v20  ;;  %v1112_v26 = vpop.f32.mrf.mxu0  ;;  %v1280_v35 = vmul.f32 1.442695, %v1270_v32  ;;  %v1271_v54 = vmul.f32 %v1263_v11, %v1159_v3 }
 0x2bb   : > { %2179 = vrcp.f32 %v1175_v13  ;;  %v1160_v27 = vand.u32 2147483647, %v2956_v4  ;;  %v2963_v28 = vmul.f32 0.70710677, %v2959_v31  ;;  %v2965_v34 = vadd.f32 %v1825_v45, %v1112_v26 }
 0x2bc   : > { %v1173_v22 = vadd.f32 1.0, %v1165_v16  ;;  %v1170_v8 = vmul.f32 0.3275911, %v1162_v9  ;;  %v1261_v55 = vsub.f32 0.0, %v1157_v12  ;;  %v1276_v44 = vmul.f32 1.442695, %v1268_v37 }
 0x2bd   : > { %v1168_v38 = vmul.f32 0.3275911, %v1160_v27  ;;  %v1163_v52 = vand.u32 2147483647, %v2963_v28  ;;  %v2969_v53 = vmul.f32 0.70710677, %v2965_v34 }
 0x2be   : > { %2181 = vrcp.f32 %v1173_v22  ;;  %v1178_v29 = vadd.f32 1.0, %v1170_v8  ;;  %v1266_v51 = vsub.f32 0.0, %v1162_v9  ;;  %v1282_v1 = vmul.f32 1.442695, %v1271_v54 }
 0x2bf   : > { %v1176_v41 = vadd.f32 1.0, %v1168_v38  ;;  %v1171_v43 = vmul.f32 0.3275911, %v1163_v52  ;;  %v2976_v45 = vand.u32 2147483647, %v2969_v53  ;;  %v1269_v2 = vmul.f32 %v1261_v55, %v1157_v12 }
 0x2c0   : > { %2183 = vrcp.f32 %v1178_v29  ;;  %v1264_v7 = vsub.f32 0.0, %v1160_v27  ;;  %v2503_v13 = vmov -1.0   ;;  %v1274_v19 = vmul.f32 %v1266_v51, %v1162_v9 }
 0x2c1   : > { %2185 = vrcp.f32 %v1176_v41  ;;  %v1179_v56 = vadd.f32 1.0, %v1171_v43  ;;  %v1169_v60 = vmul.f32 0.3275911, %v2976_v45  ;;  %v2990_v15 = vsel %vm1142_vm2, 1.0, %v2503_v13 }
 0x2c2   : > { %2187 = vpow2.f32 %v1280_v35  ;;  %v1267_v26 = vsub.f32 0.0, %v1163_v52  ;;  %v2999_v8 = vsel %vm1140_vm3, 1.0, %v2503_v13  ;;  %v1278_v11 = vmul.f32 1.442695, %v1269_v2 }
 0x2c3   : > { %2189 = vrcp.f32 %v1179_v56  ;;  %v1177_v10 = vadd.f32 1.0, %v1169_v60  ;;  %v1272_v29 = vmul.f32 %v1264_v7, %v1160_v27  ;;  %v1288_v41 = vmul.f32 1.442695, %v1274_v19 }
 0x2c4   : > { %v2971_v36 = vpop.eup %2175  ;;  %2191 = vpow2.f32 %v1276_v44  ;;  %v1275_v55 = vmul.f32 %v1267_v26, %v1163_v52  ;;  %v1151_v62 = vsel %vm1143_vm4, 1.0, %v2503_v13  ;;  %vm1141_vm5 = vcmp.ge.f32.partialorder %v2945_v5, 0.0 }
 0x2c5   : > { %v1190_v42 = vmul.f32 1.0614054, %v2971_v36  ;;  %2193 = vrcp.f32 %v1177_v10  ;;  %vm1146_vm6 = vcmp.ge.f32.partialorder %v2953_v20, 0.0  ;;  %vm1144_vm7 = vcmp.ge.f32.partialorder %v2956_v4, 0.0 }
 0x2c6   : > { %v2978_v46 = vpop.eup %2177  ;;  %2195 = vpow2.f32 %v1282_v1  ;;  %vm1147_vm8 = vcmp.ge.f32.partialorder %v2963_v28, 0.0  ;;  %vm1145_vm9 = vcmp.ge.f32.partialorder %v2969_v53, 0.0  ;;  %v1130_v53 = vmul.f32 0.5, %v2948_v14 }
 0x2c7   : > { %v1198_v48 = vadd.f32 -1.4531521, %v1190_v42  ;;  %v1188_v59 = vmul.f32 1.0614054, %v2978_v46  ;;  %2197 = vpow2.f32 %v1278_v11  ;;  %v1155_v28 = vsel %vm1147_vm8, 1.0, %v2503_v13 }
 0x2c8   : > { %v2983_v61 = vpop.eup %2179  ;;  %2199 = vpow2.f32 %v1288_v41 }
 0x2c9   : > { %v1206_v0 = vmul.f32 %v2971_v36, %v1198_v48  ;;  %v1196_v3 = vadd.f32 -1.4531521, %v1188_v59  ;;  %v1191_v6 = vmul.f32 1.0614054, %v2983_v61  ;;  %v1265_v48 = vsub.f32 0.0, %v2976_v45 }
 0x2ca   : > { %v1284_v59 = vmul.f32 1.442695, %v1272_v29 }
 0x2cb   : > { %v1214_v16 = vadd.f32 1.4214138, %v1206_v0  ;;  %v2992_v22 = vpop.eup %2181  ;;  %v1204_v25 = vmul.f32 %v2978_v46, %v1196_v3  ;;  %v1199_v12 = vadd.f32 -1.4531521, %v1191_v6  ;;  %v1290_v6 = vmul.f32 1.442695, %v1275_v55 }
 0x2cc   : > { %v1189_v49 = vmul.f32 1.0614054, %v2992_v22  ;;  %2201 = vpow2.f32 %v1284_v59 }
 0x2cd   : > { %v1222_v32 = vmul.f32 %v2971_v36, %v1214_v16  ;;  %v1212_v37 = vadd.f32 1.4214138, %v1204_v25  ;;  %v1207_v9 = vmul.f32 %v2983_v61, %v1199_v12  ;;  %v3005_v57 = vpop.eup %2183  ;;  %v1273_v25 = vmul.f32 %v1265_v48, %v2976_v45 }
 0x2ce   : > { %v1197_v35 = vadd.f32 -1.4531521, %v1189_v49  ;;  %v1194_v56 = vmul.f32 1.0614054, %v3005_v57  ;;  %v3013_v52 = vpop.eup %2185  ;;  %2203 = vpow2.f32 %v1290_v6 }
 0x2cf   : > { %v1230_v38 = vadd.f32 -0.28449672, %v1222_v32  ;;  %v1220_v42 = vmul.f32 %v2978_v46, %v1212_v37  ;;  %v1215_v54 = vadd.f32 1.4214138, %v1207_v9  ;;  %v2188_v7 = vpop.eup %2187  ;;  %v1192_v19 = vmul.f32 1.0614054, %v3013_v52 }
 0x2d0   : > { %v1205_v44 = vmul.f32 %v2992_v22, %v1197_v35  ;;  %v1202_v3 = vadd.f32 -1.4531521, %v1194_v56  ;;  %v3020_v12 = vpop.eup %2189 }
 0x2d1   : > { %v1238_v43 = vmul.f32 %v2971_v36, %v1230_v38  ;;  %v1228_v51 = vadd.f32 -0.28449672, %v1220_v42  ;;  %v1223_v27 = vmul.f32 %v2983_v61, %v1215_v54  ;;  %v1200_v9 = vadd.f32 -1.4531521, %v1192_v19 }
 0x2d2   : > { %v1213_v0 = vadd.f32 1.4214138, %v1205_v44  ;;  %v1210_v49 = vmul.f32 %v3005_v57, %v1202_v3  ;;  %v1195_v29 = vmul.f32 1.0614054, %v3020_v12 }
 0x2d3   : > { %v1246_v60 = vadd.f32 0.2548296, %v1238_v43  ;;  %v1236_v1 = vmul.f32 %v2978_v46, %v1228_v51  ;;  %v1231_v2 = vadd.f32 -0.28449672, %v1223_v27  ;;  %v1208_v54 = vmul.f32 %v3013_v52, %v1200_v9 }
 0x2d4   : > { %v1221_v16 = vmul.f32 %v2992_v22, %v1213_v0  ;;  %v1218_v41 = vadd.f32 1.4214138, %v1210_v49  ;;  %v1203_v55 = vadd.f32 -1.4531521, %v1195_v29  ;;  %v1286_v43 = vmul.f32 1.442695, %v1273_v25 }
 0x2d5   : > { %v1254_v10 = vmul.f32 %v2971_v36, %v1246_v60  ;;  %v1244_v26 = vadd.f32 0.2548296, %v1236_v1  ;;  %v1239_v32 = vmul.f32 %v2983_v61, %v1231_v2  ;;  %v2192_v36 = vpop.eup %2191  ;;  %v1216_v60 = vadd.f32 1.4214138, %v1208_v54 }
 0x2d6   : > { %v1229_v37 = vadd.f32 -0.28449672, %v1221_v16  ;;  %v3026_v45 = vpop.eup %2193  ;;  %v1226_v51 = vmul.f32 %v3005_v57, %v1218_v41  ;;  %v1211_v0 = vmul.f32 %v3020_v12, %v1203_v55  ;;  %2205 = vpow2.f32 %v1286_v43 }
 0x2d7   : > { %v1294_v11 = vmul.f32 %v2188_v7, %v1254_v10  ;;  %v1252_v38 = vmul.f32 %v2978_v46, %v1244_v26  ;;  %v1247_v35 = vadd.f32 0.2548296, %v1239_v32  ;;  %v1193_v27 = vmul.f32 1.0614054, %v3026_v45  ;;  %v2196_v56 = vpop.eup %2195 }
 0x2d8   : > { %v1237_v42 = vmul.f32 %v2992_v22, %v1229_v37  ;;  %v1234_v3 = vadd.f32 -0.28449672, %v1226_v51  ;;  %v1219_v10 = vadd.f32 1.4214138, %v1211_v0  ;;  %v2198_v16 = vpop.eup %2197 }
 0x2d9   : > { %v1292_v44 = vmul.f32 %v2192_v36, %v1252_v38  ;;  %v1255_v48 = vmul.f32 %v2983_v61, %v1247_v35  ;;  %v1302_v46 = vsub.f32 1.0, %v1294_v11  ;;  %v1201_v6 = vadd.f32 -1.4531521, %v1193_v27  ;;  %v2200_v9 = vpop.eup %2199 }
 0x2da   : > { %v1245_v59 = vadd.f32 0.2548296, %v1237_v42  ;;  %v1224_v61 = vmul.f32 %v3013_v52, %v1216_v60  ;;  %v1242_v25 = vmul.f32 %v3005_v57, %v1234_v3  ;;  %v1227_v37 = vmul.f32 %v3020_v12, %v1219_v10 }
 0x2db   : > { %v1300_v1 = vsub.f32 1.0, %v1292_v44  ;;  %v1295_v2 = vmul.f32 %v2196_v56, %v1255_v48  ;;  %v1209_v26 = vmul.f32 %v3026_v45, %v1201_v6  ;;  %v1310_v29 = vmul.f32 %v1302_v46, %v2990_v15  ;;  %v2202_v48 = vpop.eup %2201 }
 0x2dc   : > { %v1253_v7 = vmul.f32 %v2992_v22, %v1245_v59  ;;  %v1232_v11 = vadd.f32 -0.28449672, %v1224_v61  ;;  %v1250_v36 = vadd.f32 0.2548296, %v1242_v25  ;;  %v1124_v35 = vmul.f32 0.5, %v2929_v50  ;;  %v2204_v60 = vpop.eup %2203 }
 0x2dd   : > { %v1303_v19 = vsub.f32 1.0, %v1295_v2  ;;  %v1308_v32 = vmul.f32 %v1300_v1, %v2999_v8  ;;  %v1217_v38 = vadd.f32 1.4214138, %v1209_v26  ;;  %v1235_v54 = vadd.f32 -0.28449672, %v1227_v37 }
 0x2de   : > { %v1293_v49 = vmul.f32 %v2198_v16, %v1253_v7  ;;  %v1240_v42 = vmul.f32 %v3013_v52, %v1232_v11  ;;  %v1149_v8 = vsel %vm1141_vm5, 1.0, %v2503_v13  ;;  %v1258_v43 = vmul.f32 %v3005_v57, %v1250_v36 }
 0x2df   : > { %v1311_v22 = vmul.f32 %v1303_v19, %v1151_v62  ;;  %v1225_v44 = vmul.f32 %v3026_v45, %v1217_v38  ;;  %v1316_v15 = vadd.f32 1.0, %v1308_v32  ;;  %v1243_v27 = vmul.f32 %v3020_v12, %v1235_v54 }
 0x2e0   : > { %v1301_v41 = vsub.f32 1.0, %v1293_v49  ;;  %v1248_v51 = vadd.f32 0.2548296, %v1240_v42  ;;  %v1318_v50 = vadd.f32 1.0, %v1310_v29  ;;  %v1127_v56 = vmul.f32 0.5, %v2935_v58 }
 0x2e1   : > { %v1319_v55 = vadd.f32 1.0, %v1311_v22  ;;  %v1125_v46 = vmul.f32 0.5, %v2941_v63  ;;  %v1233_v59 = vadd.f32 -0.28449672, %v1225_v44  ;;  %v1298_v5 = vmul.f32 %v2200_v9, %v1258_v43 }
 0x2e2   : > { %v1309_v62 = vmul.f32 %v1301_v41, %v1149_v8  ;;  %v1256_v1 = vmul.f32 %v3013_v52, %v1248_v51  ;;  %v1251_v57 = vadd.f32 0.2548296, %v1243_v27  ;;  %v1126_v2 = vmul.f32 0.5, %v2924_v47 }
 0x2e3   : > { %v1327_v3 = vmul.f32 %v1319_v55, %v1127_v56  ;;  %v1241_v6 = vmul.f32 %v3026_v45, %v1233_v59  ;;  %v1324_v7 = vmul.f32 %v1316_v15, %v1124_v35  ;;  %v1306_v52 = vsub.f32 1.0, %v1298_v5  ;;  %v2206_v49 = vpop.eup %2205 }
 0x2e4   : > { %v1317_v0 = vadd.f32 1.0, %v1309_v62  ;;  %v1296_v10 = vmul.f32 %v2202_v48, %v1256_v1  ;;  %v1259_v58 = vmul.f32 %v3020_v12, %v1251_v57  ;;  %v1326_v63 = vmul.f32 %v1318_v50, %v1126_v2 }
 0x2e5   : > { %v1249_v16 = vadd.f32 0.2548296, %v1241_v6  ;;  %v1154_v11 = vsel %vm1146_vm6, 1.0, %v2503_v13  ;;  %v1152_v12 = vsel %vm1144_vm7, 1.0, %v2503_v13  ;;  %v1153_v38 = vsel %vm1145_vm9, 1.0, %v2503_v13 }
 0x2e6   : > { %v1325_v61 = vmul.f32 %v1317_v0, %v1125_v46  ;;  %v1304_v19 = vsub.f32 1.0, %v1296_v10  ;;  %v1299_v25 = vmul.f32 %v2204_v60, %v1259_v58  ;;  %v1333_v26 = vpack.c.bf16 %v1327_v3, %v1326_v63  ;;  %v1834_v13 = vld [vmem:[#allocation10 + $0x8] ss:$0 sm:$0xff] }
 0x2e7   : > { %v1257_v32 = vmul.f32 %v3026_v45, %v1249_v16  ;;  %v1314_v29 = vmul.f32 %v1306_v52, %v1154_v11  ;;  %v1131_v42 = vmul.f32 0.5, %v2959_v31  ;;  %v1128_v54 = vmul.f32 0.5, %v2950_v17 }
 0x2e8   : > { %v1332_v47 = vpack.c.bf16 %v1325_v61, %v1324_v7  ;;  %v1307_v37 = vsub.f32 1.0, %v1299_v25  ;;  %v1312_v4 = vmul.f32 %v1304_v19, %v1152_v12  ;;  %v1129_v55 = vmul.f32 0.5, %v2965_v34 }
 0x2e9   : > { %v1297_v9 = vmul.f32 %v2206_v49, %v1257_v32  ;;  %v1322_v41 = vadd.f32 1.0, %v1314_v29 }
 0x2ea   : > { %1989 = vmatprep.mubr.bf16.mxu1 %v1332_v47  ;;  %v1315_v22 = vmul.f32 %v1307_v37, %v1155_v28  ;;  %v1320_v35 = vadd.f32 1.0, %v1312_v4 }
 0x2eb   : > { %1990 = vmatmul.mubr.bf16.vlgmr.msra.gmra.mxu1 %v1333_v26  ;;  %v1305_v36 = vsub.f32 1.0, %v1297_v9  ;;  %v1330_v15 = vmul.f32 %v1322_v41, %v1130_v53 }
 0x2ec   : > { %v1323_v45 = vadd.f32 1.0, %v1315_v22  ;;  %v1328_v44 = vmul.f32 %v1320_v35, %v1128_v54 }
 0x2ed   : > { %v1313_v20 = vmul.f32 %v1305_v36, %v1153_v38 }
 0x2ee   : > { %v1331_v43 = vmul.f32 %v1323_v45, %v1131_v42 }
 0x2ef   : > { %v1321_v8 = vadd.f32 1.0, %v1313_v20 }
 0x2f0   : > { %v1335_v51 = vpack.c.bf16 %v1331_v43, %v1330_v15 }
 0x2f1   : > { %v1329_v48 = vmul.f32 %v1321_v8, %v1129_v55 }
 0x2f3   : > { %v1334_v62 = vpack.c.bf16 %v1329_v48, %v1328_v44 }
 0x2f5   : > { %1993 = vmatprep.mubr.bf16.mxu1 %v1334_v62 }
 0x2f6   : > { %1994 = vmatmul.mubr.bf16.gmra.mxu1 %v1335_v51 }
 0x3ab   : > { %v1991_v27 = vpop.f32.mrf.mxu1 }
 0x3ac   : > { %v3071_v50 = vadd.f32 %v1991_v27, %v1834_v13 }
 0x3ad   : > { %v1439_v31 = vpop.f32.mrf.mxu1 }
 0x3ae   : > { %v3073_v56 = vadd.f32 %v1834_v13, %v1439_v31  ;;  %1474 = vadd.xlane.f32.xlu1 %v3071_v50  ;;  %v1496_v46 = vmul.f32 %v3071_v50, %v3071_v50 }
 0x3af   : > { %v1992_v17 = vpop.f32.mrf.mxu1 }
 0x3b0   : > { %v3076_v34 = vadd.f32 %v1992_v17, %v1834_v13  ;;  %1470 = vadd.xlane.f32.xlu0 %v3073_v56  ;;  %v1494_v0 = vmul.f32 %v3073_v56, %v3073_v56 }
 0x3b1   : > { %v1442_v14 = vpop.f32.mrf.mxu1 }
 0x3b2   : > { %1476 = vadd.xlane.f32.xlu1 %v3076_v34  ;;  %v3082_v59 = vadd.f32 %v1834_v13, %v1442_v14  ;;  %v1497_v60 = vmul.f32 %v3076_v34, %v3076_v34 }
 0x3b4   : > { %1506 = vadd.xlane.f32.xlu0 %v1496_v46  ;;  %v1495_v1 = vmul.f32 %v3082_v59, %v3082_v59 }
 0x3b6   : > { %1508 = vadd.xlane.f32.xlu1 %v1497_v60  ;;  %v1995_v5 = vpop.f32.mrf.mxu1  ;;  %v3120_v60 = vld [vmem:[#allocation10 + $0x9] ss:$0 sm:$0xff] }
 0x3b7   : > { %v3093_v6 = vadd.f32 %v1995_v5, %v1834_v13 }
 0x3b8   : > { %1502 = vadd.xlane.f32.xlu0 %v1494_v0  ;;  %v1455_v57 = vpop.f32.mrf.mxu1 }
 0x3b9   : > { %v3099_v10 = vadd.f32 %v1834_v13, %v1455_v57  ;;  %v1500_v52 = vmul.f32 %v3093_v6, %v3093_v6 }
 0x3ba   : > { %1504 = vadd.xlane.f32.xlu1 %v1495_v1  ;;  %v1996_v2 = vpop.f32.mrf.mxu1 }
 0x3bb   : > { %v3091_v3 = vadd.f32 %v1996_v2, %v1834_v13  ;;  %v1498_v63 = vmul.f32 %v3099_v10, %v3099_v10 }
 0x3bc   : > { %1472 = vadd.xlane.f32.xlu0 %v3082_v59  ;;  %v1458_v7 = vpop.f32.mrf.mxu1 }
 0x3bd   : > { %v3097_v61 = vadd.f32 %v1834_v13, %v1458_v7  ;;  %v1501_v16 = vmul.f32 %v3091_v3, %v3091_v3 }
 0x3be   : > { %1484 = vadd.xlane.f32.xlu1 %v3091_v3 }
 0x3bf   : > { %v1499_v58 = vmul.f32 %v3097_v61, %v3097_v61 }
 0x3c0   : > { %1482 = vadd.xlane.f32.xlu0 %v3093_v6 }
 0x3c2   : > { %1480 = vadd.xlane.f32.xlu1 %v3097_v61 }
 0x3c4   : > { %1478 = vadd.xlane.f32.xlu0 %v3099_v10 }
 0x3c6   : > { %1512 = vadd.xlane.f32.xlu1 %v1499_v58 }
 0x3c8   : > { %1510 = vadd.xlane.f32.xlu0 %v1498_v63 }
 0x3ca   : > { %1516 = vadd.xlane.f32.xlu1 %v1501_v16  ;;  %v3129_v16 = vld [vmem:[#allocation10 + $0xa] ss:$0 sm:$0xff] }
 0x3cc   : > { %1514 = vadd.xlane.f32.xlu0 %v1500_v52 }
 0x437   : > { %v1475_v19 = vpop.xlane.xlu1 %1474 }
 0x438   : > { %v1488_v47 = vmul.f32 0.020833334, %v1475_v19 }
 0x439   : > { %v1471_v25 = vpop.xlane.xlu0 %1470 }
 0x43a   : > { %v1528_v11 = vmul.f32 %v1488_v47, %v1488_v47  ;;  %v1486_v12 = vmul.f32 0.020833334, %v1471_v25  ;;  %v1544_v17 = vsub.f32 %v3071_v50, %v1488_v47 }
 0x43b   : > { %v1477_v26 = vpop.xlane.xlu1 %1476 }
 0x43c   : > { %v1489_v32 = vmul.f32 0.020833334, %v1477_v26  ;;  %v1526_v36 = vmul.f32 %v1486_v12, %v1486_v12  ;;  %v1542_v25 = vsub.f32 %v3073_v56, %v1486_v12 }
 0x43d   : > { %v1507_v49 = vpop.xlane.xlu0 %1506 }
 0x43e   : > { %v1520_v37 = vmul.f32 0.020833334, %v1507_v49  ;;  %v1529_v28 = vmul.f32 %v1489_v32, %v1489_v32  ;;  %v1545_v2 = vsub.f32 %v3076_v34, %v1489_v32 }
 0x43f   : > { %v1509_v4 = vpop.xlane.xlu1 %1508 }
 0x440   : > { %v1536_v9 = vsub.f32 %v1520_v37, %v1528_v11  ;;  %v1521_v29 = vmul.f32 0.020833334, %v1509_v4 }
 0x441   : > { %v1503_v22 = vpop.xlane.xlu0 %1502 }
 0x442   : > { %v1552_v45 = vadd.f32 1e-05, %v1536_v9  ;;  %v1537_v38 = vsub.f32 %v1521_v29, %v1529_v28  ;;  %v1518_v35 = vmul.f32 0.020833334, %v1503_v22 }
 0x443   : > { %v1505_v20 = vpop.xlane.xlu1 %1504 }
 0x444   : > { %2207 = vrsqrt.f32 %v1552_v45  ;;  %v1553_v41 = vadd.f32 1e-05, %v1537_v38  ;;  %v1534_v42 = vsub.f32 %v1518_v35, %v1526_v36  ;;  %v1519_v53 = vmul.f32 0.020833334, %v1505_v20 }
 0x445   : > { %v1473_v54 = vpop.xlane.xlu0 %1472 }
 0x446   : > { %2209 = vrsqrt.f32 %v1553_v41  ;;  %v1550_v55 = vadd.f32 1e-05, %v1534_v42  ;;  %v3111_v8 = vmul.f32 0.020833334, %v1473_v54 }
 0x447   : > { %v1485_v44 = vpop.xlane.xlu1 %1484 }
 0x448   : > { %2211 = vrsqrt.f32 %v1550_v55  ;;  %v1527_v43 = vmul.f32 %v3111_v8, %v3111_v8  ;;  %v3122_v0 = vmul.f32 0.020833334, %v1485_v44 }
 0x449   : > { %v1483_v48 = vpop.xlane.xlu0 %1482 }
 0x44a   : > { %v1535_v15 = vsub.f32 %v1519_v53, %v1527_v43  ;;  %v1492_v52 = vmul.f32 0.020833334, %v1483_v48  ;;  %v1533_v34 = vmul.f32 %v3122_v0, %v3122_v0 }
 0x44b   : > { %v1481_v51 = vpop.xlane.xlu1 %1480 }
 0x44c   : > { %v1551_v62 = vadd.f32 1e-05, %v1535_v15  ;;  %v3115_v13 = vmul.f32 0.020833334, %v1481_v51  ;;  %v1532_v56 = vmul.f32 %v1492_v52, %v1492_v52 }
 0x44d   : > { %v1479_v27 = vpop.xlane.xlu0 %1478 }
 0x44e   : > { %2213 = vrsqrt.f32 %v1551_v62  ;;  %v3117_v31 = vmul.f32 0.020833334, %v1479_v27  ;;  %v1531_v5 = vmul.f32 %v3115_v13, %v3115_v13  ;;  %v1547_v51 = vsub.f32 %v3097_v61, %v3115_v13 }
 0x44f   : > { %v1513_v14 = vpop.xlane.xlu1 %1512  ;;  %v1548_v13 = vsub.f32 %v3093_v6, %v1492_v52 }
 0x450   : > { %v1523_v1 = vmul.f32 0.020833334, %v1513_v14  ;;  %v1530_v58 = vmul.f32 %v3117_v31, %v3117_v31  ;;  %v1549_v14 = vsub.f32 %v3091_v3, %v3122_v0 }
 0x451   : > { %v2208_v46 = vpop.eup %2207  ;;  %v1511_v57 = vpop.xlane.xlu0 %1510 }
 0x452   : > { %v1568_v7 = vmul.f32 %v2208_v46, %v1544_v17  ;;  %v1522_v63 = vmul.f32 0.020833334, %v1511_v57  ;;  %v1539_v19 = vsub.f32 %v1523_v1, %v1531_v5 }
 0x453   : > { %v2210_v50 = vpop.eup %2209  ;;  %v1517_v11 = vpop.xlane.xlu1 %1516 }
 0x454   : > { %v1581_v47 = vmul.f32 %v3120_v60, %v1568_v7  ;;  %v1569_v26 = vmul.f32 %v2210_v50, %v1545_v2  ;;  %v1538_v49 = vsub.f32 %v1522_v63, %v1530_v58  ;;  %v1555_v32 = vadd.f32 1e-05, %v1539_v19 }
 0x455   : > { %v2212_v37 = vpop.eup %2211  ;;  %v1525_v4 = vmul.f32 0.020833334, %v1517_v11  ;;  %v1515_v28 = vpop.xlane.xlu0 %1514 }
 0x456   : > { %v1594_v9 = vadd.f32 %v3129_v16, %v1581_v47  ;;  %v1582_v29 = vmul.f32 %v3120_v60, %v1569_v26  ;;  %v1566_v22 = vmul.f32 %v2212_v37, %v1542_v25  ;;  %v1554_v36 = vadd.f32 1e-05, %v1538_v49 }
 0x457   : > { %2215 = vrsqrt.f32 %v1555_v32  ;;  %v1541_v12 = vsub.f32 %v1525_v4, %v1533_v34  ;;  %v1524_v45 = vmul.f32 0.020833334, %v1515_v28 }
 0x458   : > { %v1602_v38 = vadd.f32 %v1594_v9, %v2889_v30  ;;  %v1595_v35 = vadd.f32 %v3129_v16, %v1582_v29  ;;  %v1579_v20 = vmul.f32 %v3120_v60, %v1566_v22  ;;  %2217 = vrsqrt.f32 %v1554_v36 }
 0x459   : > { %v1557_v41 = vadd.f32 1e-05, %v1541_v12  ;;  %v1540_v42 = vsub.f32 %v1524_v45, %v1532_v56  ;;  %v1543_v30 = vsub.f32 %v3082_v59, %v3111_v8  ;;  %v1546_v59 = vsub.f32 %v3099_v10, %v3117_v31 }
 0x45a   : > { %1610 = vst [vmem:[%s3141_s26 + $0x10] sm:$0xff] %v1602_v38  ;;  %v1603_v54 = vadd.f32 %v1595_v35, %v2896_v21  ;;  %v1592_v55 = vadd.f32 %v3129_v16, %v1579_v20 }
 0x45b   : > { %v2214_v53 = vpop.eup %2213  ;;  %2219 = vrsqrt.f32 %v1557_v41  ;;  %v1556_v43 = vadd.f32 1e-05, %v1540_v42 }
 0x45c   : > { %1611 = vst [vmem:[%s3141_s26 + $0x18] sm:$0xff] %v1603_v54  ;;  %v1600_v44 = vadd.f32 %v1592_v55, %v2879_v18  ;;  %v1567_v48 = vmul.f32 %v2214_v53, %v1543_v30 }
 0x45d   : > { %2221 = vrsqrt.f32 %v1556_v43 }
 0x45e   : > { %1608 = vst [vmem:[%s3141_s26] sm:$0xff] %v1600_v44  ;;  %v1580_v15 = vmul.f32 %v3120_v60, %v1567_v48 }
 0x460   : > { %v1593_v62 = vadd.f32 %v3129_v16, %v1580_v15 }
 0x462   : > { %v1601_v21 = vadd.f32 %v1593_v62, %v2884_v24 }
 0x464   : > { %v2216_v27 = vpop.eup %2215  ;;  %1609 = vst [vmem:[%s3141_s26 + $0x8] sm:$0xff] %v1601_v21 }
 0x465   : > { %v2218_v8 = vpop.eup %2217  ;;  %v1571_v18 = vmul.f32 %v2216_v27, %v1547_v51 }
 0x466   : > { %v1570_v17 = vmul.f32 %v2218_v8, %v1546_v59 }
 0x467   : > { %v1584_v46 = vmul.f32 %v3120_v60, %v1571_v18 }
 0x468   : > { %v2220_v24 = vpop.eup %2219  ;;  %v1583_v61 = vmul.f32 %v3120_v60, %v1570_v17 }
 0x469   : > { %v1597_v5 = vadd.f32 %v3129_v16, %v1584_v46  ;;  %v1573_v10 = vmul.f32 %v2220_v24, %v1549_v14 }
 0x46a   : > { %v2222_v31 = vpop.eup %2221  ;;  %v1596_v1 = vadd.f32 %v3129_v16, %v1583_v61 }
 0x46b   : > { %v1605_v57 = vadd.f32 %v1597_v5, %v2906_v23  ;;  %v1586_v3 = vmul.f32 %v3120_v60, %v1573_v10  ;;  %v1572_v0 = vmul.f32 %v2222_v31, %v1548_v13 }
 0x46c   : > { %v1604_v2 = vadd.f32 %v1596_v1, %v2900_v33 }
 0x46d   : > { %1613 = vst [vmem:[%s3141_s26 + $0x28] sm:$0xff] %v1605_v57  ;;  %v1599_v6 = vadd.f32 %v3129_v16, %v1586_v3  ;;  %v1585_v7 = vmul.f32 %v3120_v60, %v1572_v0 }
 0x46e   : > { %1612 = vst [vmem:[%s3141_s26 + $0x20] sm:$0xff] %v1604_v2 }
 0x46f   : > { %v1607_v58 = vadd.f32 %v1599_v6, %v2917_v40  ;;  %v1598_v23 = vadd.f32 %v3129_v16, %v1585_v7 }
 0x471   : > { %1615 = vst [vmem:[%s3141_s26 + $0x38] sm:$0xff] %v1607_v58  ;;  %v1606_v33 = vadd.f32 %v1598_v23, %v2914_v39 }
 0x473   : > { %1614 = vst [vmem:[%s3141_s26 + $0x30] sm:$0xff] %v1606_v33 }
 0x474   : > { %2422 = shalt.err (!%p2419_p8)
}
 0x475   : > { %s2423_s19 = scalar_lea.hbm %s3180_s24, 1024  ;;  %s2427_s2 = scalar_lea.hbm %s3236_s8, 2048 }
 0x476   : > { %p2424_p3 = scmp.ne.s32.totalorder %s3180_s24, %s2423_s19  ;;  %p2428_p2 = scmp.lt.s32.totalorder %s3180_s24, %s3236_s8 }
 0x477   : > { %p2429_p10 = scmp.lt.s32.totalorder %s2427_s2, %s2423_s19 }
 0x478   : > { %p2425_p7 = pnand %p2424_p3, %p3273_p5 }
 0x479   : > { %p2430_p13 = por %p2429_p10, %p2428_p2 }
 0x47a   : > { %p2426_p12 = pneg %p2425_p7 }
 0x47c   : > { %p2431_p0 = pnand %p2430_p13, %p2426_p12 }
 0x47e   : > { %2434 = shalt.err (!%p2431_p0)
}
 0x47f   : > { %s2505_s22 = smov 128   ;;  %s2506_s4 = smov 8  }
 0x480   : > { %2021 = dma.vmem_to_hbm [thread:$0]  (%p3273_p5), %s3182_s20, 1024, %s3180_s24, %s1617_s11, %s2505_s22, %s2505_s22, %s2506_s4  }
 0x481 PF: > { %s1645_s5 = sand.u32 1, %s2477_s27   ;;  %p3274_p9 = scmp.ne.s32.totalorder %s3261_s17, 0 }
 0x482   : > { %p3275_p11 = scmp.ge.s32.totalorder %s2489_s30, 2  ;;  %s1646_s26 = scalar_lea.sflag [#allocation4], %s1645_s5 }
 0x484   : > { %p2047_p1 = pnand %p3275_p11, %p3274_p9 }
 0x486   : > { %p2048_p4 = pneg %p2047_p1 }
 0x488   : > { %2472 = dma.done.wait (%p2048_p4), %s1646_s26, 1024  }
 0x489   : > { %2474 = vsyncadd (%p2048_p4), %s1646_s26, 4294966272  ;;  %s3276_s14 = sld [smem:[#allocation21_spill]]  ;;  %p26_p6 = scmp.ge.s32.totalorder %s2660_s18, 4  }
 0x48a   : > { %s3277_s27 = smov %s2481_s28  ;;  %s3278_s28 = smov %s2485_s29 }
 0x48b   : > { %s3280_s30 = smov %s2660_s18  ;;  %28 = sbr.rel (!%p26_p6) target bundleno = 16 (0x10), region = 130 }
 0x48f   : > { %s3279_s29 = smov %s3276_s14 }
 0x490   :  { %1651 = vsyncpa [#allocation3], 1 }
 0x491   :  { %1653 = vsyncpa [#allocation3 + $0x1], 1 }
 0x492   :  { %1654 = vsyncpa [#allocation6], 1 }
 0x493   :  { %1656 = vsyncpa [#allocation6 + $0x1], 1 }
 0x494   :  { %1657 = vsyncpa [#allocation9], 1 }
 0x495   :  { %1658 = vsyncpa [#allocation12], 1 }
 0x496   :  { %1659 = vsyncpa [#allocation4], 1 }
 0x497   :  { %1661 = vsyncpa [#allocation4 + $0x1], 1 }

</bundles_post_ra>
